<compile_context>
chip_gen: v7x
topology: tpu7x:2x2x1
jax: 0.10.0
libtpu: 0.0.40
codegen_flags: <defaults>
</compile_context>

<pallas_src>
import functools

import jax
import jax.numpy as jnp
from jax import lax
from jax.experimental import pallas as pl
from jax.experimental.pallas import tpu as pltpu


_LANE = 128
_FLAT_COLS = 3 * _LANE          # 384 = lcm(3, 128): lane-dense & period-3 aligned
_MAX_COLS = 32768               # keep dense blocks a sane width


def _prod(xs):
    p = 1
    for x in xs:
        p *= int(x)
    return p


def _cdiv(a, b):
    return -(-a // b)


@functools.lru_cache(maxsize=None)
def _chip_config():
    """(vmem_capacity_bytes, n_tensorcores) — best-effort, safe fallbacks."""
    vmem = 64 * 1024 * 1024                      # conservative default (v7x-sized)
    try:
        vmem = int(pltpu.get_tpu_info().vmem_capacity_bytes)
    except Exception:
        pass
    n_cores = 1
    try:
        kind = (jax.devices()[0].device_kind or "").lower()
        # 2 TensorCores visible per device: v4 / v5p megacore, v7x dual-TC.
        if any(tag in kind for tag in ("v4", "v5p", "v7", "7x")):
            n_cores = 2
    except Exception:
        pass
    return vmem, n_cores


def _default_block_bytes(vmem_bytes):
    # Per-input-block byte target.  Per-step footprint ~= 4 * block (2 inputs,
    # double buffered) + f32 accumulator (~1-2x block) -> stays well under the
    # VMEM limit on 64-MiB and 128-MiB chips.
    return int(max(1 << 20, min(8 << 20, vmem_bytes // 20)))


def _vmem_limit_bytes(vmem_bytes):
    return int(max(32 << 20, min(int(vmem_bytes * 0.75), 64 << 20)))


def _choose_trailing_view(shape):
    """Copy-free (rows, cols) trailing-split view with lane-dense cols, or None."""
    n = len(shape)
    if n < 2:
        return None
    cands = [(_prod(shape[:k]), _prod(shape[k:])) for k in range(1, n)]
    in_band = [rc for rc in cands if _FLAT_COLS <= rc[1] <= _MAX_COLS]
    if in_band:
        return min(in_band, key=lambda rc: rc[1])
    return None


def _choose_row_tile(rows, cols, itemsize, block_bytes):
    rt = block_bytes // max(cols * itemsize, 1)
    rt = max(16, (rt // 16) * 16)       # sublane-legal for f32 / bf16
    return min(rt, rows)                # full extent is always legal


def _sq_colsum_kernel(e_ref, t_ref, out_ref, acc_ref, *,
                      rows, row_tile, blocks_per_core, has_core_axis,
                      needs_mask):
    """acc += (e - t)^2 for one (row_tile, cols) block; per-column sums out.

    e_ref/t_ref: (row_tile, cols) blocks in the original dtype (upcast per-vreg)
    out_ref    : (1, cols) per-core column sums, written on the last step only
    acc_ref    : (row_tile, cols) resident f32 VMEM accumulator (scratch)
    """
    if has_core_axis:
        c = pl.program_id(0)            # TensorCore split ("parallel")
        i = pl.program_id(1)            # row-block reduction ("arbitrary")
        n_i = pl.num_programs(1)
    else:
        c = 0
        i = pl.program_id(0)
        n_i = pl.num_programs(0)

    @pl.when(i == 0)
    def _():
        acc_ref[...] = jnp.zeros_like(acc_ref)

    d = e_ref[...].astype(jnp.float32) - t_ref[...].astype(jnp.float32)

    if needs_mask:
        vb = c * blocks_per_core + i            # virtual row-block id
        is_tail = (vb + 1) * row_tile > rows    # partial tail or phantom block

        @pl.when(is_tail)
        def _():
            row_ids = vb * row_tile + lax.broadcasted_iota(
                jnp.int32, (row_tile, 1), 0)
            dm = jnp.where(row_ids < rows, d, 0.0)
            acc_ref[...] += dm * dm

        @pl.when(jnp.logical_not(is_tail))
        def _():
            acc_ref[...] += d * d
    else:
        acc_ref[...] += d * d

    @pl.when(i == n_i - 1)
    def _():
        # Sublane (XLU) reduce -> tiny (1, cols) HBM writeback per core.
        out_ref[...] = jnp.sum(acc_ref[...], axis=0, keepdims=True)


def _sq_col_sums(e2d, t2d, *, block_bytes, n_cores, vmem_limit):
    """Per-column sums of (e - t)^2 over rows.  Returns (n_cores, 1, cols) f32."""
    rows, cols = e2d.shape
    itemsize = jnp.dtype(e2d.dtype).itemsize
    row_tile = _choose_row_tile(rows, cols, itemsize, block_bytes)
    n_row_blocks = _cdiv(rows, row_tile)
    if n_row_blocks < 2:
        n_cores = 1                      # nothing worth splitting across cores

    if n_cores > 1:
        blocks_per_core = _cdiv(n_row_blocks, n_cores)
        grid = (n_cores, blocks_per_core)
        has_core_axis = True

        def data_map(c, i):
            # Clamp phantom blocks onto the last real block; their contribution
            # is zeroed by the in-kernel row mask.
            return (jnp.minimum(c * blocks_per_core + i, n_row_blocks - 1), 0)

        out_map = lambda c, i: (c, 0, 0)
        # TODO(synk): on v7x, verify in a profile that "parallel" actually shards
        # across the two TensorCores; if not, switch to pltpu.CORE_PARALLEL.
        dims = ("parallel", "arbitrary")
    else:
        blocks_per_core = n_row_blocks
        grid = (n_row_blocks,)
        has_core_axis = False
        data_map = lambda i: (i, 0)
        out_map = lambda i: (0, 0, 0)
        dims = ("arbitrary",)

    needs_mask = (rows % row_tile != 0) or (n_cores * blocks_per_core != n_row_blocks)

    kernel = functools.partial(
        _sq_colsum_kernel, rows=rows, row_tile=row_tile,
        blocks_per_core=blocks_per_core, has_core_axis=has_core_axis,
        needs_mask=needs_mask)

    return pl.pallas_call(
        kernel,
        out_shape=jax.ShapeDtypeStruct((n_cores, 1, cols), jnp.float32),
        grid_spec=pltpu.PrefetchScalarGridSpec(
            num_scalar_prefetch=0,
            grid=grid,
            in_specs=[
                pl.BlockSpec((row_tile, cols), data_map),   # estimate
                pl.BlockSpec((row_tile, cols), data_map),   # target
            ],
            out_specs=pl.BlockSpec((None, 1, cols), out_map),
            scratch_shapes=[pltpu.VMEM((row_tile, cols), jnp.float32)],
        ),
        compiler_params=pltpu.CompilerParams(
            dimension_semantics=dims,
            vmem_limit_bytes=vmem_limit,
        ),
        cost_estimate=pl.CostEstimate(
            flops=3 * rows * cols,
            transcendentals=0,
            bytes_accessed=2 * rows * cols * itemsize + n_cores * cols * 4,
        ),
    )(e2d, t2d)


def _weighted_sq_sum(xyz_estim, xyz_target, weights, *, block_bytes=None,
                     force_cores=None):
    """Returns sum over all elements of w[coord(elem)] * (e - t)^2 (f32 scalar)."""
    assert xyz_estim.shape == xyz_target.shape
    assert xyz_estim.shape[-1] == 3, "last axis must be the (x, y, z) axis"

    vmem_bytes, chip_cores = _chip_config()
    n_cores = chip_cores if force_cores is None else int(force_cores)
    blk = _default_block_bytes(vmem_bytes) if block_bytes is None else int(block_bytes)
    vlim = _vmem_limit_bytes(vmem_bytes)
    w32 = weights.astype(jnp.float32)

    shape = xyz_estim.shape
    view = _choose_trailing_view(shape)
    if view is not None:
        rows, cols = view
        # Free reshape: collapse of contiguous leading/trailing dims, no copy.
        col_sums = _sq_col_sums(
            xyz_estim.reshape(rows, cols), xyz_target.reshape(rows, cols),
            block_bytes=blk, n_cores=n_cores, vmem_limit=vlim)
        w_row = jnp.tile(w32, cols // 3)             # periodic per-column weights
        return jnp.sum(col_sums * w_row)

    # Lane-sparse fallback (e.g. flat (N, 3)): view the flat buffer as a
    # (rows, 384) slab; handle a < 384-element remainder in plain JAX.
    total = _prod(shape)
    ef = xyz_estim.reshape(-1)
    tf = xyz_target.reshape(-1)
    main = (total // _FLAT_COLS) * _FLAT_COLS
    out = jnp.float32(0.0)
    if main > 0:
        rows = main // _FLAT_COLS
        col_sums = _sq_col_sums(
            ef[:main].reshape(rows, _FLAT_COLS), tf[:main].reshape(rows, _FLAT_COLS),
            block_bytes=blk, n_cores=n_cores, vmem_limit=vlim)
        w_row = jnp.tile(w32, _FLAT_COLS // 3)
        out = out + jnp.sum(col_sums * w_row)
    rem = total - main
    if rem:
        # TODO(synk): a zero-copy alternative is a (1, total) column-blocked
        # kernel with an in-kernel lane mask; the remainder is < 384 elements
        # so plain JAX is fine here.
        d = ef[main:].astype(jnp.float32) - tf[main:].astype(jnp.float32)
        w_tail = jnp.tile(w32, rem // 3)
        out = out + jnp.sum(w_tail * d * d)
    return out


@functools.partial(jax.jit, static_argnames=("block_bytes", "force_cores"))
def _l_total_xyz(xyz_estim, xyz_target, weights, *, block_bytes=None,
                 force_cores=None):
    n_points = _prod(xyz_estim.shape) // 3
    sse = _weighted_sq_sum(xyz_estim, xyz_target, weights,
                           block_bytes=block_bytes, force_cores=force_cores)
    return sse / jnp.float32(n_points)


class LTotalPallas:
    """JAX/Pallas port of src/loss/L_total.py::L_total (default configuration).

    With defaults wx=wy=wz=1 and we=wo=wf=wp=wi_pre=wi_post=wt=wl=-1, only the
    weighted per-axis L2 xyz loss (plus a constant-zero intention term) is active.
    """

    def __init__(self, wx=1.0, wy=1.0, wz=1.0,
                 we=-1, wo=-1, wf=-1, wp=-1, wi_pre=-1, wi_post=-1, wt=-1, wl=-1):
        self._weights = jnp.array([wx, wy, wz], dtype=jnp.float32)
        # TODO(synk): L_REE / L_obstacles / L_free_hand / L_phase / intention /
        # temporal / last-pose losses are only constructed when their weights > 0;
        # their sources were not provided, so they are not implemented here.
        assert all(w <= 0 for w in (we, wo, wf, wp, wi_pre, wi_post, wt, wl)), \
            "only the default configuration (optional losses disabled) is supported"

    def __call__(self, xyz_estim, xyz_target, *, block_bytes=None, force_cores=None):
        loss_total = _l_total_xyz(xyz_estim, xyz_target, self._weights,
                                  block_bytes=block_bytes, force_cores=force_cores)
        intention_loss = 0.0  # matches the reference forward (constant 0)
        return loss_total + intention_loss


if __name__ == "__main__":
    key = jax.random.PRNGKey(0)
    ks = jax.random.split(key, 8)

    def ref_loss(e, t, w):
        d = e.astype(jnp.float32) - t.astype(jnp.float32)
        return (w[0] * jnp.mean(d[..., 0] ** 2)
                + w[1] * jnp.mean(d[..., 1] ** 2)
                + w[2] * jnp.mean(d[..., 2] ** 2))

    # Case 1: dense lane-dense trailing view (2, 768), default weights.
    e1 = jax.random.normal(ks[0], (2, 16, 16, 3), dtype=jnp.float32)
    t1 = jax.random.normal(ks[1], (2, 16, 16, 3), dtype=jnp.float32)
    loss_fn = LTotalPallas()
    out1 = jax.block_until_ready(loss_fn(e1, t1))
    ref1 = ref_loss(e1, t1, jnp.array([1.0, 1.0, 1.0]))
    assert jnp.allclose(out1, ref1, rtol=1e-5, atol=1e-5), (out1, ref1)

    # Case 2: dense view (40, 384) with forced small blocks + 2-way core split ->
    # exercises multi-block accumulation, the tail row mask and phantom blocks.
    e2 = jax.random.normal(ks[2], (40, 8, 16, 3), dtype=jnp.float32)
    t2 = jax.random.normal(ks[3], (40, 8, 16, 3), dtype=jnp.float32)
    loss_fn2 = LTotalPallas(wx=1.0, wy=0.5, wz=2.0)
    out2 = jax.block_until_ready(
        loss_fn2(e2, t2, block_bytes=16 * 384 * 4, force_cores=2))
    ref2 = ref_loss(e2, t2, jnp.array([1.0, 0.5, 2.0]))
    assert jnp.allclose(out2, ref2, rtol=1e-5, atol=1e-5), (out2, ref2)

    # Case 3: flat (N, 3) layout, 384-aligned -> flat-mode kernel (no cols=3 cliff).
    e3 = jax.random.normal(ks[4], (1024, 3), dtype=jnp.float32)
    t3 = jax.random.normal(ks[5], (1024, 3), dtype=jnp.float32)
    out3 = jax.block_until_ready(loss_fn2(e3, t3))
    ref3 = ref_loss(e3, t3, jnp.array([1.0, 0.5, 2.0]))
    assert jnp.allclose(out3, ref3, rtol=1e-5, atol=1e-5), (out3, ref3)

    # Case 4: flat (N, 3) with a < 384-element remainder, forced small blocks and
    # core split -> main-slab kernel (mask + phantom blocks) + tiny JAX tail.
    e4 = jax.random.normal(ks[6], (10000, 3), dtype=jnp.float32)
    t4 = jax.random.normal(ks[7], (10000, 3), dtype=jnp.float32)
    out4 = jax.block_until_ready(
        loss_fn2(e4, t4, block_bytes=16 * 384 * 4, force_cores=2))
    ref4 = ref_loss(e4, t4, jnp.array([1.0, 0.5, 2.0]))
    assert jnp.allclose(out4, ref4, rtol=1e-5, atol=1e-5), (out4, ref4)

    print("KERNEL_OK")
</pallas_src>

<mosaic_0001>
module attributes {stable_mosaic.version = 11 : i64} {
  func.func @_sq_colsum_kernel(%arg0: i32, %arg1: memref<2x768xf32, #tpu.memory_space<vmem>>, %arg2: memref<2x768xf32, #tpu.memory_space<vmem>>, %arg3: memref<1x1x768xf32, #tpu.memory_space<vmem>>, %arg4: memref<2x768xf32, #tpu.memory_space<vmem>>) attributes {dimension_semantics = [#tpu.dimension_semantics<arbitrary>], iteration_bounds = array<i64: 1>, scalar_prefetch = 0 : i64, scratch_operands = 1 : i64, tpu.core_type = #tpu.core_type<tc>, window_params = [{transform_indices = @transform_0, window_bounds = array<i64: 2, 768>}, {transform_indices = @transform_1, window_bounds = array<i64: 2, 768>}, {pipeline_mode = #tpu.pipeline_mode<synchronous>, transform_indices = @transform_2, window_bounds = array<i64: 1, 1, 768>}]} {
    %c0_i32 = arith.constant 0 : i32
    %0 = arith.cmpi eq, %arg0, %c0_i32 : i32
    %1 = arith.extui %0 : i1 to i32
    %c0_i32_0 = arith.constant 0 : i32
    %2 = arith.cmpi ne, %1, %c0_i32_0 : i32
    scf.if %2 {
      %cst = arith.constant 0.000000e+00 : f32
      %13 = vector.broadcast %cst : f32 to vector<2x768xf32>
      %c0_10 = arith.constant 0 : index
      %c0_11 = arith.constant 0 : index
      %14 = vector.load %arg4[%c0_10, %c0_11] : memref<2x768xf32, #tpu.memory_space<vmem>>, vector<2x768xf32>
      tpu.vector_store %arg4[%c0_10, %c0_11], %13 {strides = array<i32>} : memref<2x768xf32, #tpu.memory_space<vmem>>, vector<2x768xf32>,
    } else {
    }
    %c0 = arith.constant 0 : index
    %c0_1 = arith.constant 0 : index
    %3 = vector.load %arg1[%c0, %c0_1] : memref<2x768xf32, #tpu.memory_space<vmem>>, vector<2x768xf32>
    %c0_2 = arith.constant 0 : index
    %c0_3 = arith.constant 0 : index
    %4 = vector.load %arg2[%c0_2, %c0_3] : memref<2x768xf32, #tpu.memory_space<vmem>>, vector<2x768xf32>
    %5 = arith.subf %3, %4 : vector<2x768xf32>
    %c0_4 = arith.constant 0 : index
    %c0_5 = arith.constant 0 : index
    %6 = vector.load %arg4[%c0_4, %c0_5] : memref<2x768xf32, #tpu.memory_space<vmem>>, vector<2x768xf32>
    %7 = arith.mulf %5, %5 : vector<2x768xf32>
    %8 = arith.addf %6, %7 : vector<2x768xf32>
    %c0_6 = arith.constant 0 : index
    %c0_7 = arith.constant 0 : index
    %9 = vector.load %arg4[%c0_6, %c0_7] : memref<2x768xf32, #tpu.memory_space<vmem>>, vector<2x768xf32>
    tpu.vector_store %arg4[%c0_6, %c0_7], %8 {strides = array<i32>} : memref<2x768xf32, #tpu.memory_space<vmem>>, vector<2x768xf32>,
    %c0_i32_8 = arith.constant 0 : i32
    %10 = arith.cmpi eq, %arg0, %c0_i32_8 : i32
    %11 = arith.extui %10 : i1 to i32
    %c0_i32_9 = arith.constant 0 : i32
    %12 = arith.cmpi ne, %11, %c0_i32_9 : i32
    scf.if %12 {
      %c0_10 = arith.constant 0 : index
      %c0_11 = arith.constant 0 : index
      %13 = vector.load %arg4[%c0_10, %c0_11] : memref<2x768xf32, #tpu.memory_space<vmem>>, vector<2x768xf32>
      %cst = arith.constant dense<0.000000e+00> : vector<768xf32>
      %14 = vector.multi_reduction <add>, %13, %cst [0] : vector<2x768xf32> to vector<768xf32>
      %15 = vector.shape_cast %14 : vector<768xf32> to vector<1x768xf32>
      %c0_12 = arith.constant 0 : index
      %c0_13 = arith.constant 0 : index
      %c0_14 = arith.constant 0 : index
      %16 = vector.load %arg3[%c0_12, %c0_13, %c0_14] : memref<1x1x768xf32, #tpu.memory_space<vmem>>, vector<1x1x768xf32>
      %17 = vector.shape_cast %16 : vector<1x1x768xf32> to vector<1x768xf32>
      %18 = vector.shape_cast %15 : vector<1x768xf32> to vector<1x1x768xf32>
      tpu.vector_store %arg3[%c0_12, %c0_13, %c0_14], %18 {strides = array<i32>} : memref<1x1x768xf32, #tpu.memory_space<vmem>>, vector<1x1x768xf32>,
    } else {
    }
    return
  }
  func.func @transform_0(%arg0: i32) -> (i32, i32) {
    %c0_i32 = arith.constant 0 : i32
    %c0_i32_0 = arith.constant 0 : i32
    return %arg0, %c0_i32 : i32, i32
  }
  func.func @transform_1(%arg0: i32) -> (i32, i32) {
    %c0_i32 = arith.constant 0 : i32
    %c0_i32_0 = arith.constant 0 : i32
    return %arg0, %c0_i32 : i32, i32
  }
  func.func @transform_2(%arg0: i32) -> (i32, i32, i32) {
    %c0_i32 = arith.constant 0 : i32
    %c0_i32_0 = arith.constant 0 : i32
    %c0_i32_1 = arith.constant 0 : i32
    %c0_i32_2 = arith.constant 0 : i32
    return %c0_i32, %c0_i32_0, %c0_i32_1 : i32, i32, i32
  }
}

</mosaic_0001>

<bundles_post_ra>
// kernel: tile.8
= control target key start
LH: loop header
LB: loop body
LE: loop exit
PB: predicated region body
PF: predicated region fallthrough
CT: control target
= control target key end

     0   :  { %s208_s0 = inlined_call_operand.vmem [shape: f32[3], index: 0, kind: input, shape index: {}]   ;;  %s209_s1 = inlined_call_operand.vmem [shape: f32[256,3], index: 1, kind: output, shape index: {}]  }
   0x1   :  { %v4_v0 = vld [vmem:[%s208_s0] ss:$0 sm:$0xff] }
   0x2   :  { %5 = vst [vmem:[%s209_s1] sm:$0xff] %v4_v0  ;;  %68 = vst [vmem:[%s209_s1 + $0x8] sm:$0xff] %v4_v0 }
   0x3   :  { %69 = vst [vmem:[%s209_s1 + $0x10] sm:$0xff] %v4_v0  ;;  %70 = vst [vmem:[%s209_s1 + $0x18] sm:$0xff] %v4_v0 }
   0x4   :  { %71 = vst [vmem:[%s209_s1 + $0x20] sm:$0xff] %v4_v0  ;;  %72 = vst [vmem:[%s209_s1 + $0x28] sm:$0xff] %v4_v0 }
   0x5   :  { %73 = vst [vmem:[%s209_s1 + $0x30] sm:$0xff] %v4_v0  ;;  %74 = vst [vmem:[%s209_s1 + $0x38] sm:$0xff] %v4_v0 }
   0x6   :  { %75 = vst [vmem:[%s209_s1 + $0x40] sm:$0xff] %v4_v0  ;;  %76 = vst [vmem:[%s209_s1 + $0x48] sm:$0xff] %v4_v0 }
   0x7   :  { %77 = vst [vmem:[%s209_s1 + $0x50] sm:$0xff] %v4_v0  ;;  %78 = vst [vmem:[%s209_s1 + $0x58] sm:$0xff] %v4_v0 }
   0x8   :  { %79 = vst [vmem:[%s209_s1 + $0x60] sm:$0xff] %v4_v0  ;;  %80 = vst [vmem:[%s209_s1 + $0x68] sm:$0xff] %v4_v0 }
   0x9   :  { %81 = vst [vmem:[%s209_s1 + $0x70] sm:$0xff] %v4_v0  ;;  %82 = vst [vmem:[%s209_s1 + $0x78] sm:$0xff] %v4_v0 }
   0xa   :  { %83 = vst [vmem:[%s209_s1 + $0x80] sm:$0xff] %v4_v0  ;;  %84 = vst [vmem:[%s209_s1 + $0x88] sm:$0xff] %v4_v0 }
   0xb   :  { %85 = vst [vmem:[%s209_s1 + $0x90] sm:$0xff] %v4_v0  ;;  %86 = vst [vmem:[%s209_s1 + $0x98] sm:$0xff] %v4_v0 }
   0xc   :  { %87 = vst [vmem:[%s209_s1 + $0xa0] sm:$0xff] %v4_v0  ;;  %88 = vst [vmem:[%s209_s1 + $0xa8] sm:$0xff] %v4_v0 }
   0xd   :  { %89 = vst [vmem:[%s209_s1 + $0xb0] sm:$0xff] %v4_v0  ;;  %90 = vst [vmem:[%s209_s1 + $0xb8] sm:$0xff] %v4_v0 }
   0xe   :  { %91 = vst [vmem:[%s209_s1 + $0xc0] sm:$0xff] %v4_v0  ;;  %92 = vst [vmem:[%s209_s1 + $0xc8] sm:$0xff] %v4_v0 }
   0xf   :  { %93 = vst [vmem:[%s209_s1 + $0xd0] sm:$0xff] %v4_v0  ;;  %94 = vst [vmem:[%s209_s1 + $0xd8] sm:$0xff] %v4_v0 }
  0x10   :  { %95 = vst [vmem:[%s209_s1 + $0xe0] sm:$0xff] %v4_v0  ;;  %96 = vst [vmem:[%s209_s1 + $0xe8] sm:$0xff] %v4_v0 }
  0x11   :  { %97 = vst [vmem:[%s209_s1 + $0xf0] sm:$0xff] %v4_v0  ;;  %98 = vst [vmem:[%s209_s1 + $0xf8] sm:$0xff] %v4_v0 }

// kernel: tile.9
= control target key start
LH: loop header
LB: loop body
LE: loop exit
PB: predicated region body
PF: predicated region fallthrough
CT: control target
= control target key end

     0   :  { %vm5_vm0 = vcmask 1041409   ;;  %vm21_vm1 = vcmask 7168   ;;  %vm25_vm2 = vcmask 15360   ;;  %s1816_s24 = smov 127   ;;  %s1817_s25 = smov 125   ;;  %vm7_vm3 = vcmask 23552   ;;  %s2885_s0 = inlined_call_operand.vmem [shape: f32[256,3], index: 0, kind: input, shape index: {}]   ;;  %s2886_s1 = inlined_call_operand.vmem [shape: f32[1,1,768], index: 1, kind: output, shape index: {}]  }
   0x1   :  { %v1426_v0 = vld [vmem:[%s2885_s0 + $0xd5] sm:$0x1]   ;;  %v1434_v6 = vld [vmem:[%s2885_s0 + $0xff] sm:$0x1]   ;;  %v1430_v10 = vld [vmem:[%s2885_s0 + $0xaa] sm:$0x1]  }
   0x2   :  { %v1427_v1 = vld [vmem:[%s2885_s0 + $0x54] sm:$0x2]   ;;  %v1435_v7 = vld [vmem:[%s2885_s0 + $0x7e] sm:$0x2]   ;;  %v1431_v11 = vld [vmem:[%s2885_s0 + $0x29] sm:$0x2]  }
   0x3   :  { %v14_v2 = vsel %vm5_vm0, %v1427_v1, %v1426_v0  ;;  %v1428_v3 = vld [vmem:[%s2885_s0 + $0xd5] sm:$0x1]   ;;  %v57_v9 = vsel %vm5_vm0, %v1435_v7, %v1434_v6  ;;  %v1432_v12 = vld [vmem:[%s2885_s0 + $0x2a] sm:$0x1]   ;;  %v36_v13 = vsel %vm5_vm0, %v1431_v11, %v1430_v10  ;;  %v1436_v15 = vld [vmem:[%s2885_s0 + $0xd4] sm:$0x1]  }
   0x4   :  { %v1429_v4 = vld [vmem:[%s2885_s0 + $0x54] sm:$0x2]   ;;  %58 = vrot.lane.b32.xlu1 %v57_v9, %s1817_s25  ;;  %v1433_v14 = vld [vmem:[%s2885_s0 + $0xa9] sm:$0x2]   ;;  %v1437_v17 = vld [vmem:[%s2885_s0 + $0x53] sm:$0x2]  }
   0x5   :  { %v20_v5 = vsel %vm5_vm0, %v1429_v4, %v1428_v3  ;;  %v42_v16 = vsel %vm5_vm0, %v1433_v14, %v1432_v12  ;;  %v1438_v18 = vld [vmem:[%s2885_s0 + $0x29] sm:$0x1]   ;;  %v68_v20 = vsel %vm5_vm0, %v1437_v17, %v1436_v15  ;;  %v1440_v22 = vld [vmem:[%s2885_s0 + $0xfe] sm:$0x1]   ;;  %s1818_s11 = smov 126   ;;  %s1819_s12 = smov 124  }
   0x6   :  { %v22_v8 = vsel %vm21_vm1, %v20_v5, %v14_v2  ;;  %v44_v19 = vsel %vm25_vm2, %v42_v16, %v36_v13  ;;  %v1439_v21 = vld [vmem:[%s2885_s0 + $0xa8] sm:$0x2]   ;;  %v1441_v23 = vld [vmem:[%s2885_s0 + $0x7d] sm:$0x2]   ;;  %v1442_v26 = vld [vmem:[%s2885_s0 + $0xd3] sm:$0x1]  }
   0x7   :  { %23 = vrot.lane.b32.xlu0 %v22_v8, %s1816_s24  ;;  %v79_v24 = vsel %vm5_vm0, %v1439_v21, %v1438_v18  ;;  %v89_v25 = vsel %vm5_vm0, %v1441_v23, %v1440_v22  ;;  %v1443_v27 = vld [vmem:[%s2885_s0 + $0x52] sm:$0x2]   ;;  %v1444_v28 = vld [vmem:[%s2885_s0 + $0x28] sm:$0x1]   ;;  %s1820_s21 = smov 123   ;;  %s1821_s22 = smov 122  }
   0x8   :  { %69 = vrot.lane.b32.xlu1 %v68_v20, %s1819_s12  ;;  %v1445_v29 = vld [vmem:[%s2885_s0 + $0xa7] sm:$0x2]   ;;  %v100_v30 = vsel %vm5_vm0, %v1443_v27, %v1442_v26  ;;  %v1446_v32 = vld [vmem:[%s2885_s0 + $0xfd] sm:$0x1]   ;;  %v1448_v34 = vld [vmem:[%s2885_s0 + $0xd2] sm:$0x1]  }
   0x9   :  { %v111_v31 = vsel %vm5_vm0, %v1445_v29, %v1444_v28  ;;  %v1447_v33 = vld [vmem:[%s2885_s0 + $0x7c] sm:$0x2]   ;;  %v1449_v35 = vld [vmem:[%s2885_s0 + $0x51] sm:$0x2]   ;;  %s1822_s2 = smov 121   ;;  %s1823_s3 = smov 120  }
   0xa   :  { %v121_v36 = vsel %vm5_vm0, %v1447_v33, %v1446_v32  ;;  %v132_v37 = vsel %vm5_vm0, %v1449_v35, %v1448_v34  ;;  %v1450_v38 = vld [vmem:[%s2885_s0 + $0x27] sm:$0x1]   ;;  %v1452_v40 = vld [vmem:[%s2885_s0 + $0xfc] sm:$0x1]   ;;  %s1824_s12 = smov 119   ;;  %s1825_s13 = smov 118  }
   0xb   :  { %45 = vrot.lane.b32.xlu0 %v44_v19, %s1818_s11  ;;  %v1451_v39 = vld [vmem:[%s2885_s0 + $0xa6] sm:$0x2]   ;;  %v1453_v41 = vld [vmem:[%s2885_s0 + $0x7b] sm:$0x2]   ;;  %v1454_v44 = vld [vmem:[%s2885_s0 + $0xd1] sm:$0x1]  }
   0xc   :  { %90 = vrot.lane.b32.xlu1 %v89_v25, %s1821_s22  ;;  %v143_v42 = vsel %vm5_vm0, %v1451_v39, %v1450_v38  ;;  %v153_v43 = vsel %vm5_vm0, %v1453_v41, %v1452_v40  ;;  %v1455_v45 = vld [vmem:[%s2885_s0 + $0x50] sm:$0x2]   ;;  %v1456_v46 = vld [vmem:[%s2885_s0 + $0x26] sm:$0x1]   ;;  %s1826_s22 = smov 117   ;;  %s1827_s23 = smov 116  }
   0xd   :  { %v1457_v47 = vld [vmem:[%s2885_s0 + $0xa5] sm:$0x2]   ;;  %v164_v48 = vsel %vm5_vm0, %v1455_v45, %v1454_v44  ;;  %v1458_v50 = vld [vmem:[%s2885_s0 + $0xfb] sm:$0x1]   ;;  %v1460_v52 = vld [vmem:[%s2885_s0 + $0xd0] sm:$0x1]  }
   0xe   :  { %v175_v49 = vsel %vm5_vm0, %v1457_v47, %v1456_v46  ;;  %v1459_v51 = vld [vmem:[%s2885_s0 + $0x7a] sm:$0x2]   ;;  %v1461_v53 = vld [vmem:[%s2885_s0 + $0x4f] sm:$0x2]   ;;  %s1829_s4 = smov 114   ;;  %s1831_s14 = smov 112  }
   0xf   :  { %80 = vrot.lane.b32.xlu0 %v79_v24, %s1820_s21  ;;  %v185_v54 = vsel %vm5_vm0, %v1459_v51, %v1458_v50  ;;  %v196_v55 = vsel %vm5_vm0, %v1461_v53, %v1460_v52  ;;  %v1462_v56 = vld [vmem:[%s2885_s0 + $0x25] sm:$0x1]   ;;  %v1464_v58 = vld [vmem:[%s2885_s0 + $0xfa] sm:$0x1]   ;;  %v1466_v62 = vld [vmem:[%s2885_s0 + $0xcf] sm:$0x1]  }
  0x10   :  { %112 = vrot.lane.b32.xlu1 %v111_v31, %s1823_s3  ;;  %s1828_s3 = smov 115   ;;  %v1463_v57 = vld [vmem:[%s2885_s0 + $0xa4] sm:$0x2]   ;;  %v1465_v59 = vld [vmem:[%s2885_s0 + $0x79] sm:$0x2]   ;;  %s1833_s24 = smov 110  }
  0x11   :  { %v207_v60 = vsel %vm5_vm0, %v1463_v57, %v1462_v56  ;;  %v217_v61 = vsel %vm5_vm0, %v1465_v59, %v1464_v58  ;;  %v1467_v63 = vld [vmem:[%s2885_s0 + $0x4e] sm:$0x2]   ;;  %v1468_v0 = vld [vmem:[%s2885_s0 + $0x24] sm:$0x1]   ;;  %v1470_v4 = vld [vmem:[%s2885_s0 + $0xf9] sm:$0x1]  }
  0x12   :  { %v1469_v1 = vld [vmem:[%s2885_s0 + $0xa3] sm:$0x2]   ;;  %v228_v2 = vsel %vm5_vm0, %v1467_v63, %v1466_v62  ;;  %v1471_v5 = vld [vmem:[%s2885_s0 + $0x78] sm:$0x2]   ;;  %v1472_v6 = vld [vmem:[%s2885_s0 + $0xce] sm:$0x1]  }
  0x13   :  { %101 = vrot.lane.b32.xlu0 %v100_v30, %s1822_s2  ;;  %v239_v3 = vsel %vm5_vm0, %v1469_v1, %v1468_v0  ;;  %v1473_v7 = vld [vmem:[%s2885_s0 + $0x4d] sm:$0x2]   ;;  %s1835_s5 = smov 108   ;;  %v249_v8 = vsel %vm5_vm0, %v1471_v5, %v1470_v4  ;;  %v1474_v10 = vld [vmem:[%s2885_s0 + $0x23] sm:$0x1]   ;;  %s1837_s15 = smov 106  }
  0x14   :  { %133 = vrot.lane.b32.xlu1 %v132_v37, %s1825_s13  ;;  %s1830_s13 = smov 113   ;;  %v260_v9 = vsel %vm5_vm0, %v1473_v7, %v1472_v6  ;;  %v1475_v11 = vld [vmem:[%s2885_s0 + $0xa2] sm:$0x2]   ;;  %v1476_v12 = vld [vmem:[%s2885_s0 + $0xf8] sm:$0x1]   ;;  %s1839_s25 = smov 104  }
  0x15   :  { %v1477_v13 = vld [vmem:[%s2885_s0 + $0x77] sm:$0x2]   ;;  %v271_v14 = vsel %vm5_vm0, %v1475_v11, %v1474_v10  ;;  %v1478_v16 = vld [vmem:[%s2885_s0 + $0xcd] sm:$0x1]   ;;  %v1480_v18 = vld [vmem:[%s2885_s0 + $0x22] sm:$0x1]  }
  0x16   :  { %v281_v15 = vsel %vm5_vm0, %v1477_v13, %v1476_v12  ;;  %v1479_v17 = vld [vmem:[%s2885_s0 + $0x4c] sm:$0x2]   ;;  %v1481_v19 = vld [vmem:[%s2885_s0 + $0xa1] sm:$0x2]   ;;  %v1482_v22 = vld [vmem:[%s2885_s0 + $0xf7] sm:$0x1]  }
  0x17   :  { %122 = vrot.lane.b32.xlu0 %v121_v36, %s1824_s12  ;;  %v292_v20 = vsel %vm5_vm0, %v1479_v17, %v1478_v16  ;;  %v303_v21 = vsel %vm5_vm0, %v1481_v19, %v1480_v18  ;;  %v1483_v23 = vld [vmem:[%s2885_s0 + $0x76] sm:$0x2]   ;;  %v1484_v24 = vld [vmem:[%s2885_s0 + $0xcc] sm:$0x1]   ;;  %v2_v26 = vld [vmem:[%s2885_s0] sm:$0x1]  }
  0x18   :  { %154 = vrot.lane.b32.xlu1 %v153_v43, %s1827_s23  ;;  %s1832_s23 = smov 111   ;;  %v1485_v25 = vld [vmem:[%s2885_s0 + $0x4b] sm:$0x2]   ;;  %s1840_s7 = smov 103   ;;  %v1425_v27 = vld [vmem:[%s2885_s0 + $0x7f] sm:$0x2]   ;;  %v313_v28 = vsel %vm5_vm0, %v1483_v23, %v1482_v22 }
  0x19   :  { %s1841_s8 = smov 102   ;;  %v324_v29 = vsel %vm5_vm0, %v1485_v25, %v1484_v24  ;;  %v1486_v30 = vld [vmem:[%s2885_s0 + $0x21] sm:$0x1]   ;;  %v6_v31 = vsel %vm5_vm0, %v1425_v27, %v2_v26  ;;  %v1488_v33 = vld [vmem:[%s2885_s0 + $0xf6] sm:$0x1]   ;;  %s1842_s19 = smov 101  }
  0x1a   :  { %v1487_v32 = vld [vmem:[%s2885_s0 + $0xa0] sm:$0x2]   ;;  %v1489_v34 = vld [vmem:[%s2885_s0 + $0x75] sm:$0x2]   ;;  %s1843_s20 = smov 100   ;;  %s1844_s29 = smov 99  }
  0x1b   :  { %144 = vrot.lane.b32.xlu0 %v143_v42, %s1826_s22  ;;  %8 = vst.msk [vmem:[#allocation0] ss:$24 sm:$0x3] %vm7_vm3, %v6_v31   ;;  %v335_v35 = vsel %vm5_vm0, %v1487_v32, %v1486_v30  ;;  %v345_v36 = vsel %vm5_vm0, %v1489_v34, %v1488_v33  ;;  %v1490_v37 = vld [vmem:[%s2885_s0 + $0xcb] sm:$0x1]   ;;  %s1845_s30 = smov 98  }
  0x1c   :  { %176 = vrot.lane.b32.xlu1 %v175_v49, %s1829_s4  ;;  %s1834_s4 = smov 109   ;;  %v1491_v38 = vld [vmem:[%s2885_s0 + $0x4a] sm:$0x2]   ;;  %v1492_v39 = vld [vmem:[%s2885_s0 + $0x20] sm:$0x1]   ;;  %s1846_s10 = smov 97  }
  0x1d   :  { %v1493_v40 = vld [vmem:[%s2885_s0 + $0x9f] sm:$0x2]   ;;  %v356_v41 = vsel %vm5_vm0, %v1491_v38, %v1490_v37  ;;  %v1494_v43 = vld [vmem:[%s2885_s0 + $0xf5] sm:$0x1]   ;;  %v1496_v45 = vld [vmem:[%s2885_s0 + $0xca] sm:$0x1]  }
  0x1e   :  { %v367_v42 = vsel %vm5_vm0, %v1493_v40, %v1492_v39  ;;  %v1495_v44 = vld [vmem:[%s2885_s0 + $0x74] sm:$0x2]   ;;  %v1497_v46 = vld [vmem:[%s2885_s0 + $0x49] sm:$0x2]   ;;  %s1847_s11 = smov 96   ;;  %s1849_s21 = smov 94  }
  0x1f   :  { %165 = vrot.lane.b32.xlu0 %v164_v48, %s1828_s3  ;;  %v377_v47 = vsel %vm5_vm0, %v1495_v44, %v1494_v43  ;;  %v388_v48 = vsel %vm5_vm0, %v1497_v46, %v1496_v45  ;;  %v1498_v49 = vld [vmem:[%s2885_s0 + $0x1f] sm:$0x1]   ;;  %v1500_v51 = vld [vmem:[%s2885_s0 + $0xf4] sm:$0x1]   ;;  %v1503_v56 = vld [vmem:[%s2885_s0 + $0x48] sm:$0x2]  }
  0x20   :  { %197 = vrot.lane.b32.xlu1 %v196_v55, %s1831_s14  ;;  %s1836_s14 = smov 107   ;;  %v1499_v50 = vld [vmem:[%s2885_s0 + $0x9e] sm:$0x2]   ;;  %v1501_v52 = vld [vmem:[%s2885_s0 + $0x73] sm:$0x2]   ;;  %s1851_s2 = smov 92  }
  0x21   :  { %v399_v53 = vsel %vm5_vm0, %v1499_v50, %v1498_v49  ;;  %v1502_v55 = vld [vmem:[%s2885_s0 + $0xc9] sm:$0x1]   ;;  %v1504_v57 = vld [vmem:[%s2885_s0 + $0x1e] sm:$0x1]   ;;  %v1507_v62 = vld [vmem:[%s2885_s0 + $0x72] sm:$0x2]  }
  0x22   :  { %v1505_v58 = vld [vmem:[%s2885_s0 + $0x9d] sm:$0x2]   ;;  %v420_v59 = vsel %vm5_vm0, %v1503_v56, %v1502_v55  ;;  %v1508_v63 = vld [vmem:[%s2885_s0 + $0xc8] sm:$0x1]   ;;  %s1853_s12 = smov 90   ;;  %s1855_s22 = smov 88  }
  0x23   :  { %186 = vrot.lane.b32.xlu0 %v185_v54, %s1830_s13  ;;  %v409_v54 = vsel %vm5_vm0, %v1501_v52, %v1500_v51  ;;  %v1509_v0 = vld [vmem:[%s2885_s0 + $0x47] sm:$0x2]   ;;  %v1511_v4 = vld [vmem:[%s2885_s0 + $0x9c] sm:$0x2]   ;;  %v1512_v5 = vld [vmem:[%s2885_s0 + $0xf2] sm:$0x1]  }
  0x24   :  { %218 = vrot.lane.b32.xlu1 %v217_v61, %s1833_s24  ;;  %s1838_s24 = smov 105   ;;  %v1506_v61 = vld [vmem:[%s2885_s0 + $0xf3] sm:$0x1]   ;;  %v1513_v6 = vld [vmem:[%s2885_s0 + $0x71] sm:$0x2]   ;;  %s1857_s3 = smov 86  }
  0x25   :  { %v441_v1 = vsel %vm5_vm0, %v1507_v62, %v1506_v61  ;;  %v1515_v10 = vld [vmem:[%s2885_s0 + $0x46] sm:$0x2]   ;;  %v1516_v11 = vld [vmem:[%s2885_s0 + $0x1c] sm:$0x1]   ;;  %v1519_v16 = vld [vmem:[%s2885_s0 + $0x70] sm:$0x2]  }
  0x26   :  { %v1517_v12 = vld [vmem:[%s2885_s0 + $0x9b] sm:$0x2]   ;;  %v1520_v17 = vld [vmem:[%s2885_s0 + $0xc6] sm:$0x1]   ;;  %s1859_s13 = smov 84   ;;  %vm28_vm4 = vcmask 1048568  }
  0x27   :  { %208 = vrot.lane.b32.xlu0 %v207_v60, %s1832_s23  ;;  %v431_v60 = vsel %vm5_vm0, %v1505_v58, %v1504_v57  ;;  %v1521_v18 = vld [vmem:[%s2885_s0 + $0x45] sm:$0x2]   ;;  %v1523_v22 = vld [vmem:[%s2885_s0 + $0x9a] sm:$0x2]   ;;  %v1524_v23 = vld [vmem:[%s2885_s0 + $0xf0] sm:$0x1]  }
  0x28   :  { %240 = vrot.lane.b32.xlu1 %v239_v3, %s1835_s5  ;;  %v1510_v3 = vld [vmem:[%s2885_s0 + $0x1d] sm:$0x1]   ;;  %v1525_v24 = vld [vmem:[%s2885_s0 + $0x6f] sm:$0x2]   ;;  %s1861_s23 = smov 82   ;;  %s1869_s5 = smov 74  }
  0x29   :  { %v463_v7 = vsel %vm5_vm0, %v1511_v4, %v1510_v3  ;;  %v537_v26 = vsel %vm5_vm0, %v1525_v24, %v1524_v23  ;;  %v1526_v27 = vld [vmem:[%s2885_s0 + $0xc5] sm:$0x1]   ;;  %v1529_v30 = vld [vmem:[%s2885_s0 + $0x99] sm:$0x2]   ;;  %v1530_v33 = vld [vmem:[%s2885_s0 + $0xef] sm:$0x1]  }
  0x2a   :  { %v1531_v34 = vld [vmem:[%s2885_s0 + $0x6e] sm:$0x2]   ;;  %v1534_v39 = vld [vmem:[%s2885_s0 + $0x19] sm:$0x1]   ;;  %v1538_v45 = vld [vmem:[%s2885_s0 + $0xc3] sm:$0x1]  }
  0x2b   :  { %229 = vrot.lane.b32.xlu0 %v228_v2, %s1834_s4  ;;  %v452_v2 = vsel %vm5_vm0, %v1509_v0, %v1508_v63  ;;  %s1863_s4 = smov 80   ;;  %v569_v37 = vsel %vm5_vm0, %v1531_v34, %v1530_v33  ;;  %v1535_v40 = vld [vmem:[%s2885_s0 + $0x98] sm:$0x2]   ;;  %v1539_v46 = vld [vmem:[%s2885_s0 + $0x42] sm:$0x2]   ;;  %vm60_vm5 = vcmask 1048552  }
  0x2c   :  { %261 = vrot.lane.b32.xlu1 %v260_v9, %s1837_s15  ;;  %v1514_v9 = vld [vmem:[%s2885_s0 + $0xc7] sm:$0x1]   ;;  %v591_v43 = vsel %vm5_vm0, %v1535_v40, %v1534_v39  ;;  %v612_v49 = vsel %vm5_vm0, %v1539_v46, %v1538_v45  ;;  %v1542_v51 = vld [vmem:[%s2885_s0 + $0xed] sm:$0x1]   ;;  %s1871_s15 = smov 72   ;;  %vm50_vm6 = vcmask 1048560  }
  0x2d   :  { %v484_v13 = vsel %vm5_vm0, %v1515_v10, %v1514_v9  ;;  %v1543_v52 = vld [vmem:[%s2885_s0 + $0x6c] sm:$0x2]   ;;  %v1546_v57 = vld [vmem:[%s2885_s0 + $0x17] sm:$0x1]   ;;  %v1550_v63 = vld [vmem:[%s2885_s0 + $0xc1] sm:$0x1]  }
  0x2e   :  { %v633_v55 = vsel %vm5_vm0, %v1543_v52, %v1542_v51  ;;  %v1547_v58 = vld [vmem:[%s2885_s0 + $0x96] sm:$0x2]   ;;  %v1552_v3 = vld [vmem:[%s2885_s0 + $0x16] sm:$0x1]   ;;  %s1875_s6 = smov 68   ;;  %vm71_vm7 = vcmask 1040352  }
  0x2f   :  { %250 = vrot.lane.b32.xlu0 %v249_v8, %s1836_s14  ;;  %v473_v8 = vsel %vm5_vm0, %v1513_v6, %v1512_v5  ;;  %s1865_s14 = smov 78   ;;  %v655_v61 = vsel %vm5_vm0, %v1547_v58, %v1546_v57  ;;  %v1553_v4 = vld [vmem:[%s2885_s0 + $0x95] sm:$0x2]   ;;  %v1555_v10 = vld [vmem:[%s2885_s0 + $0x6a] sm:$0x2]   ;;  %vm82_vm8 = vcmask 1032152  }
  0x30   :  { %282 = vrot.lane.b32.xlu1 %v281_v15, %s1839_s25  ;;  %v1518_v15 = vld [vmem:[%s2885_s0 + $0xf1] sm:$0x1]   ;;  %s1873_s25 = smov 70   ;;  %v687_v6 = vsel %vm5_vm0, %v1553_v4, %v1552_v3  ;;  %s1877_s16 = smov 66   ;;  %vm92_vm9 = vcmask 1023952   ;;  %vm103_vm10 = vcmask 1015752  }
  0x31   :  { %v505_v19 = vsel %vm5_vm0, %v1519_v16, %v1518_v15  ;;  %v1558_v15 = vld [vmem:[%s2885_s0 + $0x15] sm:$0x1]   ;;  %s1879_s26 = smov 64   ;;  %vm114_vm11 = vcmask 1007552   ;;  %v1562_v23 = vld [vmem:[%s2885_s0 + $0xbf] sm:$0x1]  }
  0x32   :  { %vm124_vm12 = vcmask 999352   ;;  %vm135_vm13 = vcmask 991152   ;;  %v1567_v34 = vld [vmem:[%s2885_s0 + $0x68] sm:$0x2]   ;;  %vm146_vm14 = vcmask 982952   ;;  %s1883_s17 = smov 60  }
  0x33   :  { %272 = vrot.lane.b32.xlu0 %v271_v14, %s1838_s24  ;;  %v495_v14 = vsel %vm5_vm0, %v1517_v12, %v1516_v11  ;;  %s1867_s24 = smov 76   ;;  %v1556_v11 = vld [vmem:[%s2885_s0 + $0xc0] sm:$0x1]   ;;  %vm156_vm15 = vcmask 974752   ;;  %v1570_v39 = vld [vmem:[%s2885_s0 + $0x13] sm:$0x1]  }
  0x34   :  { %304 = vrot.lane.b32.xlu1 %v303_v21, %s1841_s8  ;;  %v1522_v21 = vld [vmem:[%s2885_s0 + $0x1b] sm:$0x1]   ;;  %v1557_v12 = vld [vmem:[%s2885_s0 + $0x3f] sm:$0x2]   ;;  %s1885_s27 = smov 58   ;;  %vm188_vm3 = vcmask 950152  }
  0x35   :  { %v527_v25 = vsel %vm5_vm0, %v1523_v22, %v1522_v21  ;;  %v1576_v51 = vld [vmem:[%s2885_s0 + $0x12] sm:$0x1]   ;;  %s1887_s8 = smov 56   ;;  %v1579_v58 = vld [vmem:[%s2885_s0 + $0x66] sm:$0x2]   ;;  %s1889_s18 = smov 54  }
  0x36   :  { %v1577_v52 = vld [vmem:[%s2885_s0 + $0x91] sm:$0x2]   ;;  %v1584_v3 = vld [vmem:[%s2885_s0 + $0xe6] sm:$0x1]   ;;  %s1891_s28 = smov 52   ;;  %s1893_s9 = smov 50  }
  0x37   :  { %293 = vrot.lane.b32.xlu0 %v292_v20, %s1840_s7  ;;  %v516_v20 = vsel %vm5_vm0, %v1521_v18, %v1520_v17  ;;  %v1559_v18 = vld [vmem:[%s2885_s0 + $0x94] sm:$0x2]   ;;  %s1881_s7 = smov 62   ;;  %v1585_v4 = vld [vmem:[%s2885_s0 + $0x65] sm:$0x2]  }
  0x38   :  { %325 = vrot.lane.b32.xlu1 %v324_v29, %s1843_s20  ;;  %s1848_s20 = smov 95   ;;  %v1528_v29 = vld [vmem:[%s2885_s0 + $0x1a] sm:$0x1]   ;;  %v719_v21 = vsel %vm5_vm0, %v1559_v18, %v1558_v15  ;;  %v1590_v15 = vld [vmem:[%s2885_s0 + $0xe5] sm:$0x1]  }
  0x39   :  { %v559_v32 = vsel %vm5_vm0, %v1529_v30, %v1528_v29  ;;  %v1591_v18 = vld [vmem:[%s2885_s0 + $0x64] sm:$0x2]  }
  0x3b   :  { %314 = vrot.lane.b32.xlu0 %v313_v28, %s1842_s19  ;;  %v1527_v28 = vld [vmem:[%s2885_s0 + $0x44] sm:$0x2]   ;;  %s1895_s19 = smov 48  }
  0x3c   :  { %346 = vrot.lane.b32.xlu1 %v345_v36, %s1845_s30  ;;  %s1850_s30 = smov 93   ;;  %v548_v31 = vsel %vm5_vm0, %v1527_v28, %v1526_v27  ;;  %v1533_v36 = vld [vmem:[%s2885_s0 + $0x43] sm:$0x2]   ;;  %v1564_v27 = vld [vmem:[%s2885_s0 + $0x14] sm:$0x1]  }
  0x3d   :  { %v1565_v28 = vld [vmem:[%s2885_s0 + $0x93] sm:$0x2]  }
  0x3e   :  { %v751_v30 = vsel %vm5_vm0, %v1565_v28, %v1564_v27  ;;  %v1596_v27 = vld [vmem:[%s2885_s0 + $0xe4] sm:$0x1]  }
  0x3f   :  { %336 = vrot.lane.b32.xlu0 %v335_v35, %s1844_s29  ;;  %v1532_v35 = vld [vmem:[%s2885_s0 + $0xc4] sm:$0x1]   ;;  %s1897_s29 = smov 46  }
  0x40   :  { %368 = vrot.lane.b32.xlu1 %v367_v42, %s1847_s11  ;;  %s1852_s11 = smov 91   ;;  %v580_v38 = vsel %vm5_vm0, %v1533_v36, %v1532_v35  ;;  %v1537_v42 = vld [vmem:[%s2885_s0 + $0x6d] sm:$0x2]   ;;  %v1568_v35 = vld [vmem:[%s2885_s0 + $0xbe] sm:$0x1]  }
  0x41   :  { %v1569_v36 = vld [vmem:[%s2885_s0 + $0x3d] sm:$0x2]   ;;  %v1597_v28 = vld [vmem:[%s2885_s0 + $0x63] sm:$0x2]  }
  0x43   :  { %357 = vrot.lane.b32.xlu0 %v356_v41, %s1846_s10  ;;  %v1536_v41 = vld [vmem:[%s2885_s0 + $0xee] sm:$0x1]   ;;  %s1899_s10 = smov 44  }
  0x44   :  { %389 = vrot.lane.b32.xlu1 %v388_v48, %s1849_s21  ;;  %s1854_s21 = smov 89   ;;  %v601_v44 = vsel %vm5_vm0, %v1537_v42, %v1536_v41  ;;  %v1541_v48 = vld [vmem:[%s2885_s0 + $0x97] sm:$0x2]   ;;  %v1571_v42 = vld [vmem:[%s2885_s0 + $0x92] sm:$0x2]  }
  0x45   :  { %v783_v45 = vsel %vm5_vm0, %v1571_v42, %v1570_v39  ;;  %v1602_v39 = vld [vmem:[%s2885_s0 + $0xe3] sm:$0x1]  }
  0x46   :  { %v1603_v42 = vld [vmem:[%s2885_s0 + $0x62] sm:$0x2]  }
  0x47   :  { %378 = vrot.lane.b32.xlu0 %v377_v47, %s1848_s20  ;;  %v1540_v47 = vld [vmem:[%s2885_s0 + $0x18] sm:$0x1]   ;;  %s1901_s20 = smov 42  }
  0x48   :  { %410 = vrot.lane.b32.xlu1 %v409_v54, %s1851_s2  ;;  %s1856_s2 = smov 87   ;;  %v623_v50 = vsel %vm5_vm0, %v1541_v48, %v1540_v47  ;;  %v1545_v54 = vld [vmem:[%s2885_s0 + $0x41] sm:$0x2]   ;;  %v1574_v47 = vld [vmem:[%s2885_s0 + $0xbd] sm:$0x1]  }
  0x4b   :  { %400 = vrot.lane.b32.xlu0 %v399_v53, %s1850_s30  ;;  %v1544_v53 = vld [vmem:[%s2885_s0 + $0xc2] sm:$0x1]   ;;  %s1903_s30 = smov 40  }
  0x4c   :  { %432 = vrot.lane.b32.xlu1 %v431_v60, %s1853_s12  ;;  %s1858_s12 = smov 85   ;;  %v644_v56 = vsel %vm5_vm0, %v1545_v54, %v1544_v53  ;;  %v1549_v60 = vld [vmem:[%s2885_s0 + $0x6b] sm:$0x2]   ;;  %v815_v54 = vsel %vm5_vm0, %v1577_v52, %v1576_v51  ;;  %v1608_v51 = vld [vmem:[%s2885_s0 + $0xe2] sm:$0x1]  }
  0x4d   :  { %v1609_v52 = vld [vmem:[%s2885_s0 + $0x61] sm:$0x2]  }
  0x4f   :  { %421 = vrot.lane.b32.xlu0 %v420_v59, %s1852_s11  ;;  %v1548_v59 = vld [vmem:[%s2885_s0 + $0xec] sm:$0x1]   ;;  %s1905_s11 = smov 38  }
  0x50   :  { %453 = vrot.lane.b32.xlu1 %v452_v2, %s1855_s22  ;;  %s1860_s22 = smov 83   ;;  %v665_v62 = vsel %vm5_vm0, %v1549_v60, %v1548_v59  ;;  %v1551_v2 = vld [vmem:[%s2885_s0 + $0x40] sm:$0x2]   ;;  %v1580_v59 = vld [vmem:[%s2885_s0 + $0xbc] sm:$0x1]  }
  0x51   :  { %v676_v5 = vsel %vm5_vm0, %v1551_v2, %v1550_v63  ;;  %v1581_v60 = vld [vmem:[%s2885_s0 + $0x3b] sm:$0x2]   ;;  %v1582_v63 = vld [vmem:[%s2885_s0 + $0x11] sm:$0x1]  }
  0x52   :  { %v1583_v2 = vld [vmem:[%s2885_s0 + $0x90] sm:$0x2]  }
  0x53   :  { %442 = vrot.lane.b32.xlu0 %v441_v1, %s1854_s21  ;;  %s1907_s21 = smov 36  }
  0x54   :  { %474 = vrot.lane.b32.xlu1 %v473_v8, %s1857_s3  ;;  %s1862_s3 = smov 81  }
  0x57   :  { %464 = vrot.lane.b32.xlu0 %v463_v7, %s1856_s2  ;;  %v1554_v7 = vld [vmem:[%s2885_s0 + $0xeb] sm:$0x1]   ;;  %s1909_s2 = smov 34  }
  0x58   :  { %496 = vrot.lane.b32.xlu1 %v495_v14, %s1859_s13  ;;  %s1864_s13 = smov 79   ;;  %v708_v14 = vsel %vm5_vm0, %v1557_v12, %v1556_v11  ;;  %v1588_v11 = vld [vmem:[%s2885_s0 + $0x10] sm:$0x1]  }
  0x59   :  { %v1589_v12 = vld [vmem:[%s2885_s0 + $0x8f] sm:$0x2]  }
  0x5b   :  { %485 = vrot.lane.b32.xlu0 %v484_v13, %s1858_s12  ;;  %v697_v13 = vsel %vm5_vm0, %v1555_v10, %v1554_v7  ;;  %v1586_v7 = vld [vmem:[%s2885_s0 + $0xbb] sm:$0x1]   ;;  %s1911_s12 = smov 32  }
  0x5c   :  { %517 = vrot.lane.b32.xlu1 %v516_v20, %s1861_s23  ;;  %s1866_s23 = smov 77   ;;  %v1561_v20 = vld [vmem:[%s2885_s0 + $0x69] sm:$0x2]   ;;  %v1587_v10 = vld [vmem:[%s2885_s0 + $0x3a] sm:$0x2]  }
  0x5f   :  { %506 = vrot.lane.b32.xlu0 %v505_v19, %s1860_s22  ;;  %v1560_v19 = vld [vmem:[%s2885_s0 + $0xea] sm:$0x1]   ;;  %s1913_s22 = smov 30  }
  0x60   :  { %538 = vrot.lane.b32.xlu1 %v537_v26, %s1863_s4  ;;  %s1868_s4 = smov 75   ;;  %v729_v22 = vsel %vm5_vm0, %v1561_v20, %v1560_v19  ;;  %v1563_v26 = vld [vmem:[%s2885_s0 + $0x3e] sm:$0x2]   ;;  %v1592_v19 = vld [vmem:[%s2885_s0 + $0xba] sm:$0x1]  }
  0x61   :  { %v740_v29 = vsel %vm5_vm0, %v1563_v26, %v1562_v23  ;;  %v1593_v20 = vld [vmem:[%s2885_s0 + $0x39] sm:$0x2]   ;;  %v1594_v23 = vld [vmem:[%s2885_s0 + $0xf] sm:$0x1]  }
  0x62   :  { %v1595_v26 = vld [vmem:[%s2885_s0 + $0x8e] sm:$0x2]  }
  0x63   :  { %528 = vrot.lane.b32.xlu0 %v527_v25, %s1862_s3  ;;  %s1915_s3 = smov 28  }
  0x64   :  { %560 = vrot.lane.b32.xlu1 %v559_v32, %s1865_s14  ;;  %s1870_s14 = smov 73  }
  0x67   :  { %549 = vrot.lane.b32.xlu0 %v548_v31, %s1864_s13  ;;  %v1566_v31 = vld [vmem:[%s2885_s0 + $0xe9] sm:$0x1]   ;;  %s1917_s13 = smov 26  }
  0x68   :  { %581 = vrot.lane.b32.xlu1 %v580_v38, %s1867_s24  ;;  %s1872_s24 = smov 71   ;;  %v772_v38 = vsel %vm5_vm0, %v1569_v36, %v1568_v35  ;;  %v1600_v35 = vld [vmem:[%s2885_s0 + $0xe] sm:$0x1]  }
  0x69   :  { %v1601_v36 = vld [vmem:[%s2885_s0 + $0x8d] sm:$0x2]  }
  0x6b   :  { %570 = vrot.lane.b32.xlu0 %v569_v37, %s1866_s23  ;;  %v761_v37 = vsel %vm5_vm0, %v1567_v34, %v1566_v31  ;;  %v1598_v31 = vld [vmem:[%s2885_s0 + $0xb9] sm:$0x1]   ;;  %s1919_s23 = smov 24  }
  0x6c   :  { %602 = vrot.lane.b32.xlu1 %v601_v44, %s1869_s5  ;;  %s1874_s5 = smov 69   ;;  %v1573_v44 = vld [vmem:[%s2885_s0 + $0x67] sm:$0x2]   ;;  %v1599_v34 = vld [vmem:[%s2885_s0 + $0x38] sm:$0x2]  }
  0x6f   :  { %592 = vrot.lane.b32.xlu0 %v591_v43, %s1868_s4  ;;  %v1572_v43 = vld [vmem:[%s2885_s0 + $0xe8] sm:$0x1]   ;;  %s1921_s4 = smov 22  }
  0x70   :  { %624 = vrot.lane.b32.xlu1 %v623_v50, %s1871_s15  ;;  %s1876_s15 = smov 67   ;;  %v793_v46 = vsel %vm5_vm0, %v1573_v44, %v1572_v43  ;;  %v1575_v50 = vld [vmem:[%s2885_s0 + $0x3c] sm:$0x2]   ;;  %v1604_v43 = vld [vmem:[%s2885_s0 + $0xb8] sm:$0x1]  }
  0x71   :  { %v804_v53 = vsel %vm5_vm0, %v1575_v50, %v1574_v47  ;;  %v1605_v44 = vld [vmem:[%s2885_s0 + $0x37] sm:$0x2]   ;;  %v1606_v47 = vld [vmem:[%s2885_s0 + $0xd] sm:$0x1]  }
  0x72   :  { %v1607_v50 = vld [vmem:[%s2885_s0 + $0x8c] sm:$0x2]  }
  0x73   :  { %613 = vrot.lane.b32.xlu0 %v612_v49, %s1870_s14  ;;  %s1923_s14 = smov 20  }
  0x74   :  { %645 = vrot.lane.b32.xlu1 %v644_v56, %s1873_s25  ;;  %s1878_s25 = smov 65  }
  0x76   :  { %v59_v1 = vpop.permute.xlu1 %58  }
  0x77   :  { %634 = vrot.lane.b32.xlu0 %v633_v55, %s1872_s24  ;;  %v1578_v55 = vld [vmem:[%s2885_s0 + $0xe7] sm:$0x1]   ;;  %s1925_s24 = smov 18  }
  0x78   :  { %666 = vrot.lane.b32.xlu1 %v665_v62, %s1875_s6  ;;  %s1880_s6 = smov 63   ;;  %v836_v62 = vsel %vm5_vm0, %v1581_v60, %v1580_v59  ;;  %v1612_v59 = vld [vmem:[%s2885_s0 + $0xc] sm:$0x1]  }
  0x79   :  { %v24_v0 = vpop.permute.xlu0 %23   ;;  %v1613_v60 = vld [vmem:[%s2885_s0 + $0x8b] sm:$0x2]  }
  0x7a   :  { %27 = vst.msk [vmem:[#allocation0 + $0x28] ss:$-24 sm:$0x3] %vm25_vm2, %v24_v0   ;;  %v70_v9 = vpop.permute.xlu1 %69   ;;  %vm178_vm2 = vcmask 958352  }
  0x7b   :  { %30 = vst.msk [vmem:[#allocation0 + $0x20] ss:$-24 sm:$0x3] %vm28_vm4, %v24_v0   ;;  %656 = vrot.lane.b32.xlu0 %v655_v61, %s1874_s5  ;;  %vm199_vm4 = vcmask 941952   ;;  %v825_v61 = vsel %vm5_vm0, %v1579_v58, %v1578_v55  ;;  %v1610_v55 = vld [vmem:[%s2885_s0 + $0xb7] sm:$0x1]  }
  0x7c   :  { %62 = vst.msk [vmem:[#allocation0 + $0x28] ss:$-24 sm:$0x3] %vm60_vm5, %v59_v1   ;;  %688 = vrot.lane.b32.xlu1 %v687_v6, %s1877_s16  ;;  %s1882_s16 = smov 61   ;;  %vm210_vm5 = vcmask 933752   ;;  %v857_v6 = vsel %vm5_vm0, %v1585_v4, %v1584_v3  ;;  %s1927_s5 = smov 16  }
  0x7d   :  { %v46_v8 = vpop.permute.xlu0 %45   ;;  %v1611_v58 = vld [vmem:[%s2885_s0 + $0x36] sm:$0x2]   ;;  %v1616_v3 = vld [vmem:[%s2885_s0 + $0xb6] sm:$0x1]  }
  0x7e   :  { %49 = vst.msk [vmem:[#allocation0 + $0x20] ss:$-24 sm:$0x3] %vm21_vm1, %v46_v8   ;;  %v91_v17 = vpop.permute.xlu1 %90   ;;  %vm167_vm1 = vcmask 966552   ;;  %v1617_v4 = vld [vmem:[%s2885_s0 + $0x35] sm:$0x2]  }
  0x7f   :  { %51 = vst.msk [vmem:[#allocation0] ss:$24 sm:$0x3] %vm50_vm6, %v46_v8   ;;  %677 = vrot.lane.b32.xlu0 %v676_v5, %s1876_s15  ;;  %vm220_vm6 = vcmask 925552   ;;  %v847_v5 = vsel %vm5_vm0, %v1583_v2, %v1582_v63  ;;  %v1614_v63 = vld [vmem:[%s2885_s0 + $0xe1] sm:$0x1]  }
  0x80   :  { %73 = vst.msk [vmem:[#allocation0 + $0x20] ss:$-24 sm:$0x3] %vm71_vm7, %v70_v9   ;;  %709 = vrot.lane.b32.xlu1 %v708_v14, %s1879_s26  ;;  %s1884_s26 = smov 59   ;;  %vm231_vm7 = vcmask 917352   ;;  %v879_v14 = vsel %vm5_vm0, %v1589_v12, %v1588_v11  ;;  %s1929_s15 = smov 14  }
  0x81   :  { %v81_v16 = vpop.permute.xlu0 %80   ;;  %94 = vst.msk [vmem:[#allocation0 + $0x28] ss:$-24 sm:$0x3] %vm92_vm9, %v91_v17   ;;  %vm252_vm9 = vcmask 900952   ;;  %v1615_v2 = vld [vmem:[%s2885_s0 + $0x60] sm:$0x2]  }
  0x82   :  { %83 = vst.msk [vmem:[#allocation0] ss:$24 sm:$0x3] %vm82_vm8, %v81_v16   ;;  %v113_v25 = vpop.permute.xlu1 %112   ;;  %vm242_vm8 = vcmask 909152   ;;  %v1620_v11 = vld [vmem:[%s2885_s0 + $0xe0] sm:$0x1]  }
  0x83   :  { %698 = vrot.lane.b32.xlu0 %v697_v13, %s1878_s25  ;;  %115 = vst.msk [vmem:[#allocation0] ss:$24 sm:$0x3] %vm114_vm11, %v113_v25   ;;  %v868_v13 = vsel %vm5_vm0, %v1587_v10, %v1586_v7  ;;  %vm274_vm11 = vcmask 884552   ;;  %v1618_v7 = vld [vmem:[%s2885_s0 + $0xb] sm:$0x1]  }
  0x84   :  { %730 = vrot.lane.b32.xlu1 %v729_v22, %s1881_s7  ;;  %s1886_s7 = smov 57   ;;  %v900_v22 = vsel %vm5_vm0, %v1593_v20, %v1592_v19  ;;  %v1619_v10 = vld [vmem:[%s2885_s0 + $0x8a] sm:$0x2]   ;;  %v1621_v12 = vld [vmem:[%s2885_s0 + $0x5f] sm:$0x2]   ;;  %s1931_s25 = smov 12  }
  0x85   :  { %v102_v24 = vpop.permute.xlu0 %101   ;;  %v1624_v19 = vld [vmem:[%s2885_s0 + $0xa] sm:$0x1]  }
  0x86   :  { %105 = vst.msk [vmem:[#allocation0 + $0x20] ss:$-24 sm:$0x3] %vm103_vm10, %v102_v24   ;;  %v134_v33 = vpop.permute.xlu1 %133   ;;  %vm263_vm10 = vcmask 892752   ;;  %v1625_v20 = vld [vmem:[%s2885_s0 + $0x89] sm:$0x2]  }
  0x87   :  { %720 = vrot.lane.b32.xlu0 %v719_v21, %s1880_s6  ;;  %137 = vst.msk [vmem:[#allocation0 + $0x20] ss:$-24 sm:$0x3] %vm135_vm13, %v134_v33   ;;  %v889_v21 = vsel %vm5_vm0, %v1591_v18, %v1590_v15  ;;  %vm295_vm13 = vcmask 868152   ;;  %v1622_v15 = vld [vmem:[%s2885_s0 + $0xb5] sm:$0x1]  }
  0x88   :  { %752 = vrot.lane.b32.xlu1 %v751_v30, %s1883_s17  ;;  %s1888_s17 = smov 55   ;;  %v921_v30 = vsel %vm5_vm0, %v1597_v28, %v1596_v27  ;;  %v1623_v18 = vld [vmem:[%s2885_s0 + $0x34] sm:$0x2]   ;;  %v1628_v27 = vld [vmem:[%s2885_s0 + $0xb4] sm:$0x1]   ;;  %s1933_s6 = smov 10  }
  0x89   :  { %v123_v32 = vpop.permute.xlu0 %122   ;;  %v1629_v28 = vld [vmem:[%s2885_s0 + $0x33] sm:$0x2]  }
  0x8a   :  { %126 = vst.msk [vmem:[#allocation0 + $0x28] ss:$-24 sm:$0x3] %vm124_vm12, %v123_v32   ;;  %v155_v41 = vpop.permute.xlu1 %154   ;;  %vm284_vm12 = vcmask 876352  }
  0x8b   :  { %741 = vrot.lane.b32.xlu0 %v740_v29, %s1882_s16  ;;  %158 = vst.msk [vmem:[#allocation0 + $0x28] ss:$-24 sm:$0x3] %vm156_vm15, %v155_v41   ;;  %v911_v29 = vsel %vm5_vm0, %v1595_v26, %v1594_v23  ;;  %vm316_vm15 = vcmask 851752   ;;  %v1626_v23 = vld [vmem:[%s2885_s0 + $0xdf] sm:$0x1]  }
  0x8c   :  { %773 = vrot.lane.b32.xlu1 %v772_v38, %s1885_s27  ;;  %s1890_s27 = smov 53   ;;  %v943_v38 = vsel %vm5_vm0, %v1601_v36, %v1600_v35  ;;  %v1627_v26 = vld [vmem:[%s2885_s0 + $0x5e] sm:$0x2]   ;;  %v1632_v35 = vld [vmem:[%s2885_s0 + $0xde] sm:$0x1]   ;;  %s1935_s16 = smov 8  }
  0x8d   :  { %v145_v40 = vpop.permute.xlu0 %144   ;;  %v1633_v36 = vld [vmem:[%s2885_s0 + $0x5d] sm:$0x2]  }
  0x8e   :  { %147 = vst.msk [vmem:[#allocation0] ss:$24 sm:$0x3] %vm146_vm14, %v145_v40   ;;  %v177_v49 = vpop.permute.xlu1 %176   ;;  %vm306_vm14 = vcmask 859952  }
  0x8f   :  { %762 = vrot.lane.b32.xlu0 %v761_v37, %s1884_s26  ;;  %179 = vst.msk [vmem:[#allocation0] ss:$24 sm:$0x3] %vm178_vm2, %v177_v49   ;;  %v932_v37 = vsel %vm5_vm0, %v1599_v34, %v1598_v31  ;;  %vm338_vm2 = vcmask 835352   ;;  %v1630_v31 = vld [vmem:[%s2885_s0 + $0x9] sm:$0x1]  }
  0x90   :  { %794 = vrot.lane.b32.xlu1 %v793_v46, %s1887_s8  ;;  %s1892_s8 = smov 51   ;;  %v964_v46 = vsel %vm5_vm0, %v1605_v44, %v1604_v43  ;;  %v1631_v34 = vld [vmem:[%s2885_s0 + $0x88] sm:$0x2]   ;;  %v1636_v43 = vld [vmem:[%s2885_s0 + $0x8] sm:$0x1]   ;;  %s1937_s26 = smov 6  }
  0x91   :  { %v166_v48 = vpop.permute.xlu0 %165   ;;  %v1637_v44 = vld [vmem:[%s2885_s0 + $0x87] sm:$0x2]  }
  0x92   :  { %169 = vst.msk [vmem:[#allocation0 + $0x20] ss:$-24 sm:$0x3] %vm167_vm1, %v166_v48   ;;  %v198_v57 = vpop.permute.xlu1 %197   ;;  %vm327_vm1 = vcmask 843552  }
  0x93   :  { %784 = vrot.lane.b32.xlu0 %v783_v45, %s1886_s7  ;;  %201 = vst.msk [vmem:[#allocation0 + $0x20] ss:$-24 sm:$0x3] %vm199_vm4, %v198_v57   ;;  %v953_v45 = vsel %vm5_vm0, %v1603_v42, %v1602_v39  ;;  %vm359_vm4 = vcmask 818952   ;;  %v1634_v39 = vld [vmem:[%s2885_s0 + $0xb3] sm:$0x1]  }
  0x94   :  { %816 = vrot.lane.b32.xlu1 %v815_v54, %s1889_s18  ;;  %s1894_s18 = smov 49   ;;  %v985_v54 = vsel %vm5_vm0, %v1609_v52, %v1608_v51  ;;  %v1635_v42 = vld [vmem:[%s2885_s0 + $0x32] sm:$0x2]   ;;  %v1640_v51 = vld [vmem:[%s2885_s0 + $0xb2] sm:$0x1]   ;;  %s1939_s7 = smov 4  }
  0x95   :  { %v187_v56 = vpop.permute.xlu0 %186   ;;  %v1641_v52 = vld [vmem:[%s2885_s0 + $0x31] sm:$0x2]  }
  0x96   :  { %190 = vst.msk [vmem:[#allocation0 + $0x28] ss:$-24 sm:$0x3] %vm188_vm3, %v187_v56   ;;  %v219_v1 = vpop.permute.xlu1 %218   ;;  %vm348_vm3 = vcmask 827152  }
  0x97   :  { %805 = vrot.lane.b32.xlu0 %v804_v53, %s1888_s17  ;;  %222 = vst.msk [vmem:[#allocation0 + $0x28] ss:$-24 sm:$0x3] %vm220_vm6, %v219_v1   ;;  %v975_v53 = vsel %vm5_vm0, %v1607_v50, %v1606_v47  ;;  %vm380_vm6 = vcmask 802552   ;;  %v1638_v47 = vld [vmem:[%s2885_s0 + $0xdd] sm:$0x1]  }
  0x98   :  { %837 = vrot.lane.b32.xlu1 %v836_v62, %s1891_s28  ;;  %s1896_s28 = smov 47   ;;  %v1007_v62 = vsel %vm5_vm0, %v1613_v60, %v1612_v59  ;;  %v1639_v50 = vld [vmem:[%s2885_s0 + $0x5c] sm:$0x2]   ;;  %v1644_v59 = vld [vmem:[%s2885_s0 + $0xdc] sm:$0x1]  }
  0x99   :  { %v209_v0 = vpop.permute.xlu0 %208   ;;  %v1645_v60 = vld [vmem:[%s2885_s0 + $0x5b] sm:$0x2]  }
  0x9a   :  { %211 = vst.msk [vmem:[#allocation0] ss:$24 sm:$0x3] %vm210_vm5, %v209_v0   ;;  %v241_v9 = vpop.permute.xlu1 %240   ;;  %vm370_vm5 = vcmask 810752  }
  0x9b   :  { %826 = vrot.lane.b32.xlu0 %v825_v61, %s1890_s27  ;;  %243 = vst.msk [vmem:[#allocation0] ss:$24 sm:$0x3] %vm242_vm8, %v241_v9   ;;  %v996_v61 = vsel %vm5_vm0, %v1611_v58, %v1610_v55  ;;  %vm402_vm8 = vcmask 786152   ;;  %v1642_v55 = vld [vmem:[%s2885_s0 + $0x7] sm:$0x1]  }
  0x9c   :  { %858 = vrot.lane.b32.xlu1 %v857_v6, %s1893_s9  ;;  %s1898_s9 = smov 45   ;;  %v1028_v6 = vsel %vm5_vm0, %v1617_v4, %v1616_v3  ;;  %v1643_v58 = vld [vmem:[%s2885_s0 + $0x86] sm:$0x2]   ;;  %v1648_v3 = vld [vmem:[%s2885_s0 + $0x6] sm:$0x1]  }
  0x9d   :  { %v230_v8 = vpop.permute.xlu0 %229   ;;  %v1649_v4 = vld [vmem:[%s2885_s0 + $0x85] sm:$0x2]  }
  0x9e   :  { %233 = vst.msk [vmem:[#allocation0 + $0x20] ss:$-24 sm:$0x3] %vm231_vm7, %v230_v8   ;;  %v262_v17 = vpop.permute.xlu1 %261   ;;  %vm391_vm7 = vcmask 794352  }
  0x9f   :  { %848 = vrot.lane.b32.xlu0 %v847_v5, %s1892_s8  ;;  %265 = vst.msk [vmem:[#allocation0 + $0x20] ss:$-24 sm:$0x3] %vm263_vm10, %v262_v17   ;;  %v1017_v5 = vsel %vm5_vm0, %v1615_v2, %v1614_v63  ;;  %vm423_vm10 = vcmask 769752   ;;  %v1646_v63 = vld [vmem:[%s2885_s0 + $0xb1] sm:$0x1]  }
  0xa0   :  { %880 = vrot.lane.b32.xlu1 %v879_v14, %s1895_s19  ;;  %s1900_s19 = smov 43   ;;  %v1049_v14 = vsel %vm5_vm0, %v1621_v12, %v1620_v11  ;;  %v1647_v2 = vld [vmem:[%s2885_s0 + $0x30] sm:$0x2]   ;;  %v1652_v11 = vld [vmem:[%s2885_s0 + $0xb0] sm:$0x1]  }
  0xa1   :  { %v251_v16 = vpop.permute.xlu0 %250   ;;  %v1653_v12 = vld [vmem:[%s2885_s0 + $0x2f] sm:$0x2]  }
  0xa2   :  { %254 = vst.msk [vmem:[#allocation0 + $0x28] ss:$-24 sm:$0x3] %vm252_vm9, %v251_v16   ;;  %v283_v25 = vpop.permute.xlu1 %282   ;;  %vm412_vm9 = vcmask 777952  }
  0xa3   :  { %869 = vrot.lane.b32.xlu0 %v868_v13, %s1894_s18  ;;  %286 = vst.msk [vmem:[#allocation0 + $0x28] ss:$-24 sm:$0x3] %vm284_vm12, %v283_v25   ;;  %v1039_v13 = vsel %vm5_vm0, %v1619_v10, %v1618_v7  ;;  %vm444_vm12 = vcmask 753352   ;;  %v1650_v7 = vld [vmem:[%s2885_s0 + $0xdb] sm:$0x1]  }
  0xa4   :  { %901 = vrot.lane.b32.xlu1 %v900_v22, %s1897_s29  ;;  %s1902_s29 = smov 41   ;;  %v1071_v22 = vsel %vm5_vm0, %v1625_v20, %v1624_v19  ;;  %v1651_v10 = vld [vmem:[%s2885_s0 + $0x5a] sm:$0x2]   ;;  %v1656_v19 = vld [vmem:[%s2885_s0 + $0xda] sm:$0x1]  }
  0xa5   :  { %v273_v24 = vpop.permute.xlu0 %272   ;;  %v1657_v20 = vld [vmem:[%s2885_s0 + $0x59] sm:$0x2]  }
  0xa6   :  { %275 = vst.msk [vmem:[#allocation0] ss:$24 sm:$0x3] %vm274_vm11, %v273_v24   ;;  %v305_v33 = vpop.permute.xlu1 %304   ;;  %vm434_vm11 = vcmask 761552  }
  0xa7   :  { %890 = vrot.lane.b32.xlu0 %v889_v21, %s1896_s28  ;;  %307 = vst.msk [vmem:[#allocation0] ss:$24 sm:$0x3] %vm306_vm14, %v305_v33   ;;  %v1060_v21 = vsel %vm5_vm0, %v1623_v18, %v1622_v15  ;;  %vm466_vm14 = vcmask 736952   ;;  %v1654_v15 = vld [vmem:[%s2885_s0 + $0x5] sm:$0x1]  }
  0xa8   :  { %922 = vrot.lane.b32.xlu1 %v921_v30, %s1899_s10  ;;  %s1904_s10 = smov 39   ;;  %v1092_v30 = vsel %vm5_vm0, %v1629_v28, %v1628_v27  ;;  %v1655_v18 = vld [vmem:[%s2885_s0 + $0x84] sm:$0x2]   ;;  %v1660_v27 = vld [vmem:[%s2885_s0 + $0x4] sm:$0x1]  }
  0xa9   :  { %v294_v32 = vpop.permute.xlu0 %293   ;;  %v1661_v28 = vld [vmem:[%s2885_s0 + $0x83] sm:$0x2]  }
  0xaa   :  { %297 = vst.msk [vmem:[#allocation0 + $0x20] ss:$-24 sm:$0x3] %vm295_vm13, %v294_v32   ;;  %v326_v41 = vpop.permute.xlu1 %325   ;;  %vm455_vm13 = vcmask 745152  }
  0xab   :  { %912 = vrot.lane.b32.xlu0 %v911_v29, %s1898_s9  ;;  %329 = vst.msk [vmem:[#allocation0 + $0x20] ss:$-24 sm:$0x3] %vm327_vm1, %v326_v41   ;;  %v1081_v29 = vsel %vm5_vm0, %v1627_v26, %v1626_v23  ;;  %vm487_vm1 = vcmask 720552   ;;  %v1658_v23 = vld [vmem:[%s2885_s0 + $0xaf] sm:$0x1]  }
  0xac   :  { %944 = vrot.lane.b32.xlu1 %v943_v38, %s1901_s20  ;;  %s1906_s20 = smov 37   ;;  %v1113_v38 = vsel %vm5_vm0, %v1633_v36, %v1632_v35  ;;  %v1659_v26 = vld [vmem:[%s2885_s0 + $0x2e] sm:$0x2]   ;;  %v1664_v35 = vld [vmem:[%s2885_s0 + $0xae] sm:$0x1]  }
  0xad   :  { %v315_v40 = vpop.permute.xlu0 %314   ;;  %v1665_v36 = vld [vmem:[%s2885_s0 + $0x2d] sm:$0x2]  }
  0xae   :  { %318 = vst.msk [vmem:[#allocation0 + $0x28] ss:$-24 sm:$0x3] %vm316_vm15, %v315_v40   ;;  %v347_v49 = vpop.permute.xlu1 %346   ;;  %vm476_vm15 = vcmask 728752  }
  0xaf   :  { %933 = vrot.lane.b32.xlu0 %v932_v37, %s1900_s19  ;;  %350 = vst.msk [vmem:[#allocation0 + $0x28] ss:$-24 sm:$0x3] %vm348_vm3, %v347_v49   ;;  %v1103_v37 = vsel %vm5_vm0, %v1631_v34, %v1630_v31  ;;  %vm508_vm3 = vcmask 704152   ;;  %v1662_v31 = vld [vmem:[%s2885_s0 + $0xd9] sm:$0x1]  }
  0xb0   :  { %965 = vrot.lane.b32.xlu1 %v964_v46, %s1903_s30  ;;  %s1908_s30 = smov 35   ;;  %v1135_v46 = vsel %vm5_vm0, %v1637_v44, %v1636_v43  ;;  %v1663_v34 = vld [vmem:[%s2885_s0 + $0x58] sm:$0x2]   ;;  %v1668_v43 = vld [vmem:[%s2885_s0 + $0xd8] sm:$0x1]  }
  0xb1   :  { %v337_v48 = vpop.permute.xlu0 %336   ;;  %v1669_v44 = vld [vmem:[%s2885_s0 + $0x57] sm:$0x2]  }
  0xb2   :  { %339 = vst.msk [vmem:[#allocation0] ss:$24 sm:$0x3] %vm338_vm2, %v337_v48   ;;  %v369_v57 = vpop.permute.xlu1 %368   ;;  %vm498_vm2 = vcmask 712352  }
  0xb3   :  { %954 = vrot.lane.b32.xlu0 %v953_v45, %s1902_s29  ;;  %371 = vst.msk [vmem:[#allocation0] ss:$24 sm:$0x3] %vm370_vm5, %v369_v57   ;;  %v1124_v45 = vsel %vm5_vm0, %v1635_v42, %v1634_v39  ;;  %vm530_vm5 = vcmask 687752   ;;  %v1666_v39 = vld [vmem:[%s2885_s0 + $0x3] sm:$0x1]  }
  0xb4   :  { %986 = vrot.lane.b32.xlu1 %v985_v54, %s1905_s11  ;;  %s1910_s11 = smov 33   ;;  %v1156_v54 = vsel %vm5_vm0, %v1641_v52, %v1640_v51  ;;  %v1667_v42 = vld [vmem:[%s2885_s0 + $0x82] sm:$0x2]   ;;  %v1672_v51 = vld [vmem:[%s2885_s0 + $0x2] sm:$0x1]  }
  0xb5   :  { %v358_v56 = vpop.permute.xlu0 %357   ;;  %v1673_v52 = vld [vmem:[%s2885_s0 + $0x81] sm:$0x2]  }
  0xb6   :  { %361 = vst.msk [vmem:[#allocation0 + $0x20] ss:$-24 sm:$0x3] %vm359_vm4, %v358_v56   ;;  %v390_v1 = vpop.permute.xlu1 %389   ;;  %vm519_vm4 = vcmask 695952  }
  0xb7   :  { %976 = vrot.lane.b32.xlu0 %v975_v53, %s1904_s10  ;;  %393 = vst.msk [vmem:[#allocation0 + $0x20] ss:$-24 sm:$0x3] %vm391_vm7, %v390_v1   ;;  %v1145_v53 = vsel %vm5_vm0, %v1639_v50, %v1638_v47  ;;  %vm551_vm7 = vcmask 671352   ;;  %v1670_v47 = vld [vmem:[%s2885_s0 + $0xad] sm:$0x1]  }
  0xb8   :  { %1008 = vrot.lane.b32.xlu1 %v1007_v62, %s1907_s21  ;;  %s1912_s21 = smov 31   ;;  %v1177_v62 = vsel %vm5_vm0, %v1645_v60, %v1644_v59  ;;  %v1671_v50 = vld [vmem:[%s2885_s0 + $0x2c] sm:$0x2]   ;;  %v1676_v59 = vld [vmem:[%s2885_s0 + $0xac] sm:$0x1]  }
  0xb9   :  { %v379_v0 = vpop.permute.xlu0 %378   ;;  %v1677_v60 = vld [vmem:[%s2885_s0 + $0x2b] sm:$0x2]  }
  0xba   :  { %382 = vst.msk [vmem:[#allocation0 + $0x28] ss:$-24 sm:$0x3] %vm380_vm6, %v379_v0   ;;  %v411_v9 = vpop.permute.xlu1 %410   ;;  %vm540_vm6 = vcmask 679552  }
  0xbb   :  { %997 = vrot.lane.b32.xlu0 %v996_v61, %s1906_s20  ;;  %414 = vst.msk [vmem:[#allocation0 + $0x28] ss:$-24 sm:$0x3] %vm412_vm9, %v411_v9   ;;  %v1167_v61 = vsel %vm5_vm0, %v1643_v58, %v1642_v55  ;;  %vm572_vm9 = vcmask 654952   ;;  %v1674_v55 = vld [vmem:[%s2885_s0 + $0xd7] sm:$0x1]  }
  0xbc   :  { %1029 = vrot.lane.b32.xlu1 %v1028_v6, %s1909_s2  ;;  %s1914_s2 = smov 29   ;;  %v1199_v6 = vsel %vm5_vm0, %v1649_v4, %v1648_v3  ;;  %v1675_v58 = vld [vmem:[%s2885_s0 + $0x56] sm:$0x2]   ;;  %v1680_v3 = vld [vmem:[%s2885_s0 + $0xd6] sm:$0x1]  }
  0xbd   :  { %v401_v8 = vpop.permute.xlu0 %400   ;;  %v1681_v4 = vld [vmem:[%s2885_s0 + $0x55] sm:$0x2]  }
  0xbe   :  { %403 = vst.msk [vmem:[#allocation0] ss:$24 sm:$0x3] %vm402_vm8, %v401_v8   ;;  %v433_v17 = vpop.permute.xlu1 %432   ;;  %vm562_vm8 = vcmask 663152  }
  0xbf   :  { %1018 = vrot.lane.b32.xlu0 %v1017_v5, %s1908_s30  ;;  %435 = vst.msk [vmem:[#allocation0] ss:$24 sm:$0x3] %vm434_vm11, %v433_v17   ;;  %v1188_v5 = vsel %vm5_vm0, %v1647_v2, %v1646_v63  ;;  %vm594_vm11 = vcmask 638552   ;;  %v1678_v63 = vld [vmem:[%s2885_s0 + $0x1] sm:$0x1]  }
  0xc0   :  { %1050 = vrot.lane.b32.xlu1 %v1049_v14, %s1911_s12  ;;  %s1916_s12 = smov 27   ;;  %v1220_v14 = vsel %vm5_vm0, %v1653_v12, %v1652_v11  ;;  %v1679_v2 = vld [vmem:[%s2885_s0 + $0x80] sm:$0x2]  }
  0xc1   :  { %v422_v16 = vpop.permute.xlu0 %421  }
  0xc2   :  { %425 = vst.msk [vmem:[#allocation0 + $0x20] ss:$-24 sm:$0x3] %vm423_vm10, %v422_v16   ;;  %v454_v25 = vpop.permute.xlu1 %453   ;;  %vm583_vm10 = vcmask 646752  }
  0xc3   :  { %1040 = vrot.lane.b32.xlu0 %v1039_v13, %s1910_s11  ;;  %457 = vst.msk [vmem:[#allocation0 + $0x20] ss:$-24 sm:$0x3] %vm455_vm13, %v454_v25   ;;  %v1209_v13 = vsel %vm5_vm0, %v1651_v10, %v1650_v7  ;;  %vm615_vm13 = vcmask 622152   ;;  %v1683_v10 = vld [vmem:[%s2885_s0 + $0x2a] sm:$0x2]  }
  0xc4   :  { %1072 = vrot.lane.b32.xlu1 %v1071_v22, %s1913_s22  ;;  %s1918_s22 = smov 25   ;;  %v1241_v22 = vsel %vm5_vm0, %v1657_v20, %v1656_v19 }
  0xc5   :  { %v443_v24 = vpop.permute.xlu0 %442  }
  0xc6   :  { %446 = vst.msk [vmem:[#allocation0 + $0x28] ss:$-24 sm:$0x3] %vm444_vm12, %v443_v24   ;;  %v475_v33 = vpop.permute.xlu1 %474   ;;  %vm604_vm12 = vcmask 630352  }
  0xc7   :  { %1061 = vrot.lane.b32.xlu0 %v1060_v21, %s1912_s21  ;;  %478 = vst.msk [vmem:[#allocation0 + $0x28] ss:$-24 sm:$0x3] %vm476_vm15, %v475_v33   ;;  %v1231_v21 = vsel %vm5_vm0, %v1655_v18, %v1654_v15  ;;  %vm636_vm15 = vcmask 605752  }
  0xc8   :  { %1093 = vrot.lane.b32.xlu1 %v1092_v30, %s1915_s3  ;;  %s1920_s3 = smov 23   ;;  %v1263_v30 = vsel %vm5_vm0, %v1661_v28, %v1660_v27 }
  0xc9   :  { %v465_v32 = vpop.permute.xlu0 %464  }
  0xca   :  { %467 = vst.msk [vmem:[#allocation0] ss:$24 sm:$0x3] %vm466_vm14, %v465_v32   ;;  %v497_v41 = vpop.permute.xlu1 %496   ;;  %vm626_vm14 = vcmask 613952  }
  0xcb   :  { %1082 = vrot.lane.b32.xlu0 %v1081_v29, %s1914_s2  ;;  %499 = vst.msk [vmem:[#allocation0] ss:$24 sm:$0x3] %vm498_vm2, %v497_v41   ;;  %v1252_v29 = vsel %vm5_vm0, %v1659_v26, %v1658_v23  ;;  %vm658_vm2 = vcmask 589352  }
  0xcc   :  { %1114 = vrot.lane.b32.xlu1 %v1113_v38, %s1917_s13  ;;  %s1922_s13 = smov 21   ;;  %v1284_v38 = vsel %vm5_vm0, %v1665_v36, %v1664_v35 }
  0xcd   :  { %v486_v40 = vpop.permute.xlu0 %485  }
  0xce   :  { %489 = vst.msk [vmem:[#allocation0 + $0x20] ss:$-24 sm:$0x3] %vm487_vm1, %v486_v40   ;;  %v518_v49 = vpop.permute.xlu1 %517   ;;  %vm647_vm1 = vcmask 597552  }
  0xcf   :  { %1104 = vrot.lane.b32.xlu0 %v1103_v37, %s1916_s12  ;;  %521 = vst.msk [vmem:[#allocation0 + $0x20] ss:$-24 sm:$0x3] %vm519_vm4, %v518_v49   ;;  %v1273_v37 = vsel %vm5_vm0, %v1663_v34, %v1662_v31  ;;  %vm679_vm4 = vcmask 572952   ;;  %s1941_s12 = smov 2  }
  0xd0   :  { %1136 = vrot.lane.b32.xlu1 %v1135_v46, %s1919_s23  ;;  %s1924_s23 = smov 19   ;;  %v1305_v46 = vsel %vm5_vm0, %v1669_v44, %v1668_v43 }
  0xd1   :  { %v507_v48 = vpop.permute.xlu0 %506  }
  0xd2   :  { %510 = vst.msk [vmem:[#allocation0 + $0x28] ss:$-24 sm:$0x3] %vm508_vm3, %v507_v48   ;;  %v539_v57 = vpop.permute.xlu1 %538   ;;  %vm668_vm3 = vcmask 581152  }
  0xd3   :  { %1125 = vrot.lane.b32.xlu0 %v1124_v45, %s1918_s22  ;;  %542 = vst.msk [vmem:[#allocation0 + $0x28] ss:$-24 sm:$0x3] %vm540_vm6, %v539_v57   ;;  %v1295_v45 = vsel %vm5_vm0, %v1667_v42, %v1666_v39  ;;  %vm700_vm6 = vcmask 556552  }
  0xd4   :  { %1157 = vrot.lane.b32.xlu1 %v1156_v54, %s1921_s4  ;;  %s1926_s4 = smov 17   ;;  %v1327_v54 = vsel %vm5_vm0, %v1673_v52, %v1672_v51 }
  0xd5   :  { %v529_v56 = vpop.permute.xlu0 %528  }
  0xd6   :  { %531 = vst.msk [vmem:[#allocation0] ss:$24 sm:$0x3] %vm530_vm5, %v529_v56   ;;  %v561_v1 = vpop.permute.xlu1 %560   ;;  %vm690_vm5 = vcmask 564752  }
  0xd7   :  { %1146 = vrot.lane.b32.xlu0 %v1145_v53, %s1920_s3  ;;  %563 = vst.msk [vmem:[#allocation0] ss:$24 sm:$0x3] %vm562_vm8, %v561_v1   ;;  %v1316_v53 = vsel %vm5_vm0, %v1671_v50, %v1670_v47  ;;  %vm722_vm8 = vcmask 540152  }
  0xd8   :  { %1178 = vrot.lane.b32.xlu1 %v1177_v62, %s1923_s14  ;;  %s1928_s14 = smov 15   ;;  %v1348_v62 = vsel %vm5_vm0, %v1677_v60, %v1676_v59 }
  0xd9   :  { %v550_v0 = vpop.permute.xlu0 %549  }
  0xda   :  { %553 = vst.msk [vmem:[#allocation0 + $0x20] ss:$-24 sm:$0x3] %vm551_vm7, %v550_v0   ;;  %v582_v9 = vpop.permute.xlu1 %581   ;;  %vm711_vm7 = vcmask 548352  }
  0xdb   :  { %1168 = vrot.lane.b32.xlu0 %v1167_v61, %s1922_s13  ;;  %585 = vst.msk [vmem:[#allocation0 + $0x20] ss:$-24 sm:$0x3] %vm583_vm10, %v582_v9   ;;  %v1337_v61 = vsel %vm5_vm0, %v1675_v58, %v1674_v55  ;;  %vm743_vm10 = vcmask 523752   ;;  %v1682_v9 = vld [vmem:[%s2885_s0 + $0xab] sm:$0x1]  }
  0xdc   :  { %1200 = vrot.lane.b32.xlu1 %v1199_v6, %s1925_s24  ;;  %s1930_s24 = smov 13   ;;  %v1369_v6 = vsel %vm5_vm0, %v1681_v4, %v1680_v3  ;;  %s1940_s0 = smov 3   ;;  %v1380_v11 = vsel %vm5_vm0, %v1683_v10, %v1682_v9 }
  0xdd   :  { %v571_v8 = vpop.permute.xlu0 %570   ;;  %s1942_s13 = smov 1  }
  0xde   :  { %574 = vst.msk [vmem:[#allocation0 + $0x28] ss:$-24 sm:$0x3] %vm572_vm9, %v571_v8   ;;  %v603_v17 = vpop.permute.xlu1 %602   ;;  %vm732_vm9 = vcmask 531952  }
  0xdf   :  { %1189 = vrot.lane.b32.xlu0 %v1188_v5, %s1924_s23  ;;  %606 = vst.msk [vmem:[#allocation0 + $0x28] ss:$-24 sm:$0x3] %vm604_vm12, %v603_v17   ;;  %v1359_v5 = vsel %vm5_vm0, %v1679_v2, %v1678_v63  ;;  %vm764_vm12 = vcmask 507352   ;;  %vm786_vm0 = vcmask 490952  }
  0xe0   :  { %1221 = vrot.lane.b32.xlu1 %v1220_v14, %s1927_s5  ;;  %s1932_s5 = smov 11  }
  0xe1   :  { %v593_v16 = vpop.permute.xlu0 %592  }
  0xe2   :  { %595 = vst.msk [vmem:[#allocation0] ss:$24 sm:$0x3] %vm594_vm11, %v593_v16   ;;  %v625_v25 = vpop.permute.xlu1 %624   ;;  %vm754_vm11 = vcmask 515552  }
  0xe3   :  { %1210 = vrot.lane.b32.xlu0 %v1209_v13, %s1926_s4  ;;  %627 = vst.msk [vmem:[#allocation0] ss:$24 sm:$0x3] %vm626_vm14, %v625_v25   ;;  %vm796_vm14 = vcmask 482752  }
  0xe4   :  { %1242 = vrot.lane.b32.xlu1 %v1241_v22, %s1929_s15  ;;  %s1934_s15 = smov 9  }
  0xe5   :  { %v614_v24 = vpop.permute.xlu0 %613  }
  0xe6   :  { %617 = vst.msk [vmem:[#allocation0 + $0x20] ss:$-24 sm:$0x3] %vm615_vm13, %v614_v24   ;;  %v646_v33 = vpop.permute.xlu1 %645   ;;  %vm775_vm13 = vcmask 499152  }
  0xe7   :  { %1232 = vrot.lane.b32.xlu0 %v1231_v21, %s1928_s14  ;;  %649 = vst.msk [vmem:[#allocation0 + $0x20] ss:$-24 sm:$0x3] %vm647_vm1, %v646_v33   ;;  %vm818_vm1 = vcmask 466352  }
  0xe8   :  { %1264 = vrot.lane.b32.xlu1 %v1263_v30, %s1931_s25  ;;  %s1936_s25 = smov 7  }
  0xe9   :  { %v635_v32 = vpop.permute.xlu0 %634  }
  0xea   :  { %638 = vst.msk [vmem:[#allocation0 + $0x28] ss:$-24 sm:$0x3] %vm636_vm15, %v635_v32   ;;  %v667_v41 = vpop.permute.xlu1 %666   ;;  %vm807_vm15 = vcmask 474552  }
  0xeb   :  { %1253 = vrot.lane.b32.xlu0 %v1252_v29, %s1930_s24  ;;  %670 = vst.msk [vmem:[#allocation0 + $0x28] ss:$-24 sm:$0x3] %vm668_vm3, %v667_v41   ;;  %vm839_vm3 = vcmask 449952  }
  0xec   :  { %1285 = vrot.lane.b32.xlu1 %v1284_v38, %s1933_s6  ;;  %s1938_s6 = smov 5  }
  0xed   :  { %v657_v40 = vpop.permute.xlu0 %656  }
  0xee   :  { %659 = vst.msk [vmem:[#allocation0] ss:$24 sm:$0x3] %vm658_vm2, %v657_v40   ;;  %v689_v49 = vpop.permute.xlu1 %688   ;;  %vm828_vm2 = vcmask 458152  }
  0xef   :  { %1274 = vrot.lane.b32.xlu0 %v1273_v37, %s1932_s5  ;;  %691 = vst.msk [vmem:[#allocation0] ss:$24 sm:$0x3] %vm690_vm5, %v689_v49   ;;  %vm860_vm5 = vcmask 433552  }
  0xf0   :  { %1306 = vrot.lane.b32.xlu1 %v1305_v46, %s1935_s16 }
  0xf1   :  { %v678_v48 = vpop.permute.xlu0 %677  }
  0xf2   :  { %681 = vst.msk [vmem:[#allocation0 + $0x20] ss:$-24 sm:$0x3] %vm679_vm4, %v678_v48   ;;  %v710_v57 = vpop.permute.xlu1 %709   ;;  %vm850_vm4 = vcmask 441752  }
  0xf3   :  { %1296 = vrot.lane.b32.xlu0 %v1295_v45, %s1934_s15  ;;  %713 = vst.msk [vmem:[#allocation0 + $0x20] ss:$-24 sm:$0x3] %vm711_vm7, %v710_v57   ;;  %vm882_vm7 = vcmask 417152  }
  0xf4   :  { %1328 = vrot.lane.b32.xlu1 %v1327_v54, %s1937_s26 }
  0xf5   :  { %v699_v56 = vpop.permute.xlu0 %698  }
  0xf6   :  { %702 = vst.msk [vmem:[#allocation0 + $0x28] ss:$-24 sm:$0x3] %vm700_vm6, %v699_v56   ;;  %v731_v1 = vpop.permute.xlu1 %730   ;;  %vm871_vm6 = vcmask 425352  }
  0xf7   :  { %1317 = vrot.lane.b32.xlu0 %v1316_v53, %s1936_s25  ;;  %734 = vst.msk [vmem:[#allocation0 + $0x28] ss:$-24 sm:$0x3] %vm732_vm9, %v731_v1   ;;  %vm903_vm9 = vcmask 400752  }
  0xf8   :  { %1349 = vrot.lane.b32.xlu1 %v1348_v62, %s1939_s7 }
  0xf9   :  { %v721_v0 = vpop.permute.xlu0 %720  }
  0xfa   :  { %723 = vst.msk [vmem:[#allocation0] ss:$24 sm:$0x3] %vm722_vm8, %v721_v0   ;;  %v753_v8 = vpop.permute.xlu1 %752   ;;  %vm892_vm8 = vcmask 408952  }
  0xfb   :  { %1338 = vrot.lane.b32.xlu0 %v1337_v61, %s1938_s6  ;;  %755 = vst.msk [vmem:[#allocation0] ss:$24 sm:$0x3] %vm754_vm11, %v753_v8   ;;  %vm924_vm11 = vcmask 384352  }
  0xfc   :  { %1370 = vrot.lane.b32.xlu1 %v1369_v6, %s1941_s12 }
  0xfd   :  { %v742_v7 = vpop.permute.xlu0 %741  }
  0xfe   :  { %745 = vst.msk [vmem:[#allocation0 + $0x20] ss:$-24 sm:$0x3] %vm743_vm10, %v742_v7   ;;  %v774_v13 = vpop.permute.xlu1 %773   ;;  %vm914_vm10 = vcmask 392552  }
  0xff   :  { %1360 = vrot.lane.b32.xlu0 %v1359_v5, %s1940_s0  ;;  %777 = vst.msk [vmem:[#allocation0 + $0x20] ss:$-24 sm:$0x3] %vm775_vm13, %v774_v13   ;;  %vm946_vm13 = vcmask 367952  }
 0x101   :  { %v763_v12 = vpop.permute.xlu0 %762  }
 0x102   :  { %766 = vst.msk [vmem:[#allocation0 + $0x28] ss:$-24 sm:$0x3] %vm764_vm12, %v763_v12   ;;  %v795_v15 = vpop.permute.xlu1 %794   ;;  %vm935_vm12 = vcmask 376152  }
 0x103   :  { %1381 = vrot.lane.b32.xlu0 %v1380_v11, %s1942_s13  ;;  %798 = vst.msk [vmem:[#allocation0 + $0x28] ss:$-24 sm:$0x3] %vm796_vm14, %v795_v15   ;;  %vm967_vm14 = vcmask 351552  }
 0x105   :  { %v785_v14 = vpop.permute.xlu0 %784  }
 0x106   :  { %787 = vst.msk [vmem:[#allocation0] ss:$24 sm:$0x3] %vm786_vm0, %v785_v14   ;;  %v817_v17 = vpop.permute.xlu1 %816   ;;  %vm956_vm0 = vcmask 359752  }
 0x107   :  { %819 = vst.msk [vmem:[#allocation0] ss:$24 sm:$0x3] %vm818_vm1, %v817_v17   ;;  %vm988_vm1 = vcmask 335152  }
 0x109   :  { %v806_v16 = vpop.permute.xlu0 %805  }
 0x10a   :  { %809 = vst.msk [vmem:[#allocation0 + $0x20] ss:$-24 sm:$0x3] %vm807_vm15, %v806_v16   ;;  %v838_v19 = vpop.permute.xlu1 %837   ;;  %vm978_vm15 = vcmask 343352  }
 0x10b   :  { %841 = vst.msk [vmem:[#allocation0 + $0x20] ss:$-24 sm:$0x3] %vm839_vm3, %v838_v19   ;;  %vm1010_vm3 = vcmask 318752  }
 0x10d   :  { %v827_v18 = vpop.permute.xlu0 %826  }
 0x10e   :  { %830 = vst.msk [vmem:[#allocation0 + $0x28] ss:$-24 sm:$0x3] %vm828_vm2, %v827_v18   ;;  %v859_v21 = vpop.permute.xlu1 %858   ;;  %vm999_vm2 = vcmask 326952  }
 0x10f   :  { %862 = vst.msk [vmem:[#allocation0 + $0x28] ss:$-24 sm:$0x3] %vm860_vm5, %v859_v21   ;;  %vm1031_vm5 = vcmask 302352  }
 0x111   :  { %v849_v20 = vpop.permute.xlu0 %848  }
 0x112   :  { %851 = vst.msk [vmem:[#allocation0] ss:$24 sm:$0x3] %vm850_vm4, %v849_v20   ;;  %v881_v23 = vpop.permute.xlu1 %880   ;;  %vm1020_vm4 = vcmask 310552  }
 0x113   :  { %883 = vst.msk [vmem:[#allocation0] ss:$24 sm:$0x3] %vm882_vm7, %v881_v23   ;;  %vm1052_vm7 = vcmask 285952  }
 0x115   :  { %v870_v22 = vpop.permute.xlu0 %869  }
 0x116   :  { %873 = vst.msk [vmem:[#allocation0 + $0x20] ss:$-24 sm:$0x3] %vm871_vm6, %v870_v22   ;;  %v902_v25 = vpop.permute.xlu1 %901   ;;  %vm1042_vm6 = vcmask 294152  }
 0x117   :  { %905 = vst.msk [vmem:[#allocation0 + $0x20] ss:$-24 sm:$0x3] %vm903_vm9, %v902_v25   ;;  %vm1074_vm9 = vcmask 269552  }
 0x119   :  { %v891_v24 = vpop.permute.xlu0 %890  }
 0x11a   :  { %894 = vst.msk [vmem:[#allocation0 + $0x28] ss:$-24 sm:$0x3] %vm892_vm8, %v891_v24   ;;  %v923_v27 = vpop.permute.xlu1 %922   ;;  %vm1063_vm8 = vcmask 277752  }
 0x11b   :  { %926 = vst.msk [vmem:[#allocation0 + $0x28] ss:$-24 sm:$0x3] %vm924_vm11, %v923_v27   ;;  %vm1095_vm11 = vcmask 253152  }
 0x11d   :  { %v913_v26 = vpop.permute.xlu0 %912  }
 0x11e   :  { %915 = vst.msk [vmem:[#allocation0] ss:$24 sm:$0x3] %vm914_vm10, %v913_v26   ;;  %v945_v29 = vpop.permute.xlu1 %944   ;;  %vm1084_vm10 = vcmask 261352  }
 0x11f   :  { %947 = vst.msk [vmem:[#allocation0] ss:$24 sm:$0x3] %vm946_vm13, %v945_v29   ;;  %vm1116_vm13 = vcmask 236752  }
 0x121   :  { %v934_v28 = vpop.permute.xlu0 %933  }
 0x122   :  { %937 = vst.msk [vmem:[#allocation0 + $0x20] ss:$-24 sm:$0x3] %vm935_vm12, %v934_v28   ;;  %v966_v31 = vpop.permute.xlu1 %965   ;;  %vm1106_vm12 = vcmask 244952  }
 0x123   :  { %969 = vst.msk [vmem:[#allocation0 + $0x20] ss:$-24 sm:$0x3] %vm967_vm14, %v966_v31   ;;  %vm1138_vm14 = vcmask 220352  }
 0x125   :  { %v955_v30 = vpop.permute.xlu0 %954  }
 0x126   :  { %958 = vst.msk [vmem:[#allocation0 + $0x28] ss:$-24 sm:$0x3] %vm956_vm0, %v955_v30   ;;  %v987_v33 = vpop.permute.xlu1 %986   ;;  %vm1127_vm0 = vcmask 228552  }
 0x127   :  { %990 = vst.msk [vmem:[#allocation0 + $0x28] ss:$-24 sm:$0x3] %vm988_vm1, %v987_v33   ;;  %vm1159_vm1 = vcmask 203952  }
 0x129   :  { %v977_v32 = vpop.permute.xlu0 %976  }
 0x12a   :  { %979 = vst.msk [vmem:[#allocation0] ss:$24 sm:$0x3] %vm978_vm15, %v977_v32   ;;  %v1009_v35 = vpop.permute.xlu1 %1008   ;;  %vm1148_vm15 = vcmask 212152  }
 0x12b   :  { %1011 = vst.msk [vmem:[#allocation0] ss:$24 sm:$0x3] %vm1010_vm3, %v1009_v35   ;;  %vm1180_vm3 = vcmask 187552  }
 0x12d   :  { %v998_v34 = vpop.permute.xlu0 %997  }
 0x12e   :  { %1001 = vst.msk [vmem:[#allocation0 + $0x20] ss:$-24 sm:$0x3] %vm999_vm2, %v998_v34   ;;  %v1030_v37 = vpop.permute.xlu1 %1029   ;;  %vm1170_vm2 = vcmask 195752  }
 0x12f   :  { %1033 = vst.msk [vmem:[#allocation0 + $0x20] ss:$-24 sm:$0x3] %vm1031_vm5, %v1030_v37   ;;  %vm1202_vm5 = vcmask 171152  }
 0x131   :  { %v1019_v36 = vpop.permute.xlu0 %1018  }
 0x132   :  { %1022 = vst.msk [vmem:[#allocation0 + $0x28] ss:$-24 sm:$0x3] %vm1020_vm4, %v1019_v36   ;;  %v1051_v39 = vpop.permute.xlu1 %1050   ;;  %vm1191_vm4 = vcmask 179352  }
 0x133   :  { %1054 = vst.msk [vmem:[#allocation0 + $0x28] ss:$-24 sm:$0x3] %vm1052_vm7, %v1051_v39   ;;  %vm1223_vm7 = vcmask 154752  }
 0x135   :  { %v1041_v38 = vpop.permute.xlu0 %1040  }
 0x136   :  { %1043 = vst.msk [vmem:[#allocation0] ss:$24 sm:$0x3] %vm1042_vm6, %v1041_v38   ;;  %v1073_v41 = vpop.permute.xlu1 %1072   ;;  %vm1212_vm6 = vcmask 162952  }
 0x137   :  { %1075 = vst.msk [vmem:[#allocation0] ss:$24 sm:$0x3] %vm1074_vm9, %v1073_v41   ;;  %vm1244_vm9 = vcmask 138352  }
 0x139   :  { %v1062_v40 = vpop.permute.xlu0 %1061  }
 0x13a   :  { %1065 = vst.msk [vmem:[#allocation0 + $0x20] ss:$-24 sm:$0x3] %vm1063_vm8, %v1062_v40   ;;  %v1094_v43 = vpop.permute.xlu1 %1093   ;;  %vm1234_vm8 = vcmask 146552  }
 0x13b   :  { %1097 = vst.msk [vmem:[#allocation0 + $0x20] ss:$-24 sm:$0x3] %vm1095_vm11, %v1094_v43   ;;  %vm1266_vm11 = vcmask 121952  }
 0x13d   :  { %v1083_v42 = vpop.permute.xlu0 %1082  }
 0x13e   :  { %1086 = vst.msk [vmem:[#allocation0 + $0x28] ss:$-24 sm:$0x3] %vm1084_vm10, %v1083_v42   ;;  %v1115_v45 = vpop.permute.xlu1 %1114   ;;  %vm1255_vm10 = vcmask 130152  }
 0x13f   :  { %1118 = vst.msk [vmem:[#allocation0 + $0x28] ss:$-24 sm:$0x3] %vm1116_vm13, %v1115_v45   ;;  %vm1287_vm13 = vcmask 105552  }
 0x141   :  { %v1105_v44 = vpop.permute.xlu0 %1104  }
 0x142   :  { %1107 = vst.msk [vmem:[#allocation0] ss:$24 sm:$0x3] %vm1106_vm12, %v1105_v44   ;;  %v1137_v47 = vpop.permute.xlu1 %1136   ;;  %vm1276_vm12 = vcmask 113752  }
 0x143   :  { %1139 = vst.msk [vmem:[#allocation0] ss:$24 sm:$0x3] %vm1138_vm14, %v1137_v47   ;;  %vm1308_vm14 = vcmask 89152  }
 0x145   :  { %v1126_v46 = vpop.permute.xlu0 %1125  }
 0x146   :  { %1129 = vst.msk [vmem:[#allocation0 + $0x20] ss:$-24 sm:$0x3] %vm1127_vm0, %v1126_v46   ;;  %v1158_v49 = vpop.permute.xlu1 %1157   ;;  %vm1298_vm0 = vcmask 97352  }
 0x147   :  { %1161 = vst.msk [vmem:[#allocation0 + $0x20] ss:$-24 sm:$0x3] %vm1159_vm1, %v1158_v49   ;;  %vm1330_vm1 = vcmask 72752  }
 0x149   :  { %v1147_v48 = vpop.permute.xlu0 %1146  }
 0x14a   :  { %1150 = vst.msk [vmem:[#allocation0 + $0x28] ss:$-24 sm:$0x3] %vm1148_vm15, %v1147_v48   ;;  %v1179_v51 = vpop.permute.xlu1 %1178   ;;  %vm1319_vm15 = vcmask 80952  }
 0x14b   :  { %1182 = vst.msk [vmem:[#allocation0 + $0x28] ss:$-24 sm:$0x3] %vm1180_vm3, %v1179_v51   ;;  %vm1351_vm3 = vcmask 56352  }
 0x14d   :  { %v1169_v50 = vpop.permute.xlu0 %1168  }
 0x14e   :  { %1171 = vst.msk [vmem:[#allocation0] ss:$24 sm:$0x3] %vm1170_vm2, %v1169_v50   ;;  %v1201_v53 = vpop.permute.xlu1 %1200   ;;  %vm1340_vm2 = vcmask 64552  }
 0x14f   :  { %1203 = vst.msk [vmem:[#allocation0] ss:$24 sm:$0x3] %vm1202_vm5, %v1201_v53   ;;  %vm1372_vm5 = vcmask 39952  }
 0x151   :  { %v1190_v52 = vpop.permute.xlu0 %1189  }
 0x152   :  { %1193 = vst.msk [vmem:[#allocation0 + $0x20] ss:$-24 sm:$0x3] %vm1191_vm4, %v1190_v52   ;;  %v1222_v55 = vpop.permute.xlu1 %1221   ;;  %vm1362_vm4 = vcmask 48152  }
 0x153   :  { %1225 = vst.msk [vmem:[#allocation0 + $0x20] ss:$-24 sm:$0x3] %vm1223_vm7, %v1222_v55  }
 0x155   :  { %v1211_v54 = vpop.permute.xlu0 %1210  }
 0x156   :  { %1214 = vst.msk [vmem:[#allocation0 + $0x28] ss:$-24 sm:$0x3] %vm1212_vm6, %v1211_v54   ;;  %v1243_v57 = vpop.permute.xlu1 %1242   ;;  %vm1383_vm6 = vcmask 31752  }
 0x157   :  { %1246 = vst.msk [vmem:[#allocation0 + $0x28] ss:$-24 sm:$0x3] %vm1244_vm9, %v1243_v57  }
 0x159   :  { %v1233_v56 = vpop.permute.xlu0 %1232  }
 0x15a   :  { %1235 = vst.msk [vmem:[#allocation0] ss:$24 sm:$0x3] %vm1234_vm8, %v1233_v56   ;;  %v1265_v59 = vpop.permute.xlu1 %1264  }
 0x15b   :  { %1267 = vst.msk [vmem:[#allocation0] ss:$24 sm:$0x3] %vm1266_vm11, %v1265_v59  }
 0x15d   :  { %v1254_v58 = vpop.permute.xlu0 %1253  }
 0x15e   :  { %1257 = vst.msk [vmem:[#allocation0 + $0x20] ss:$-24 sm:$0x3] %vm1255_vm10, %v1254_v58   ;;  %v1286_v61 = vpop.permute.xlu1 %1285  }
 0x15f   :  { %1289 = vst.msk [vmem:[#allocation0 + $0x20] ss:$-24 sm:$0x3] %vm1287_vm13, %v1286_v61  }
 0x161   :  { %v1275_v60 = vpop.permute.xlu0 %1274  }
 0x162   :  { %1278 = vst.msk [vmem:[#allocation0 + $0x28] ss:$-24 sm:$0x3] %vm1276_vm12, %v1275_v60   ;;  %v1307_v63 = vpop.permute.xlu1 %1306  }
 0x163   :  { %1310 = vst.msk [vmem:[#allocation0 + $0x28] ss:$-24 sm:$0x3] %vm1308_vm14, %v1307_v63  }
 0x165   :  { %v1297_v62 = vpop.permute.xlu0 %1296  }
 0x166   :  { %1299 = vst.msk [vmem:[#allocation0] ss:$24 sm:$0x3] %vm1298_vm0, %v1297_v62   ;;  %v1329_v1 = vpop.permute.xlu1 %1328  }
 0x167   :  { %1331 = vst.msk [vmem:[#allocation0] ss:$24 sm:$0x3] %vm1330_vm1, %v1329_v1  }
 0x169   :  { %v1318_v0 = vpop.permute.xlu0 %1317  }
 0x16a   :  { %1321 = vst.msk [vmem:[#allocation0 + $0x20] ss:$-24 sm:$0x3] %vm1319_vm15, %v1318_v0   ;;  %v1350_v3 = vpop.permute.xlu1 %1349  }
 0x16b   :  { %1353 = vst.msk [vmem:[#allocation0 + $0x20] ss:$-24 sm:$0x3] %vm1351_vm3, %v1350_v3  }
 0x16d   :  { %v1339_v2 = vpop.permute.xlu0 %1338  }
 0x16e   :  { %1342 = vst.msk [vmem:[#allocation0 + $0x28] ss:$-24 sm:$0x3] %vm1340_vm2, %v1339_v2   ;;  %v1371_v5 = vpop.permute.xlu1 %1370  }
 0x16f   :  { %1374 = vst.msk [vmem:[#allocation0 + $0x28] ss:$-24 sm:$0x3] %vm1372_vm5, %v1371_v5  }
 0x171   :  { %v1361_v4 = vpop.permute.xlu0 %1360  }
 0x172   :  { %1363 = vst.msk [vmem:[#allocation0] ss:$24 sm:$0x3] %vm1362_vm4, %v1361_v4  }
 0x175   :  { %v1382_v6 = vpop.permute.xlu0 %1381  }
 0x176   :  { %1385 = vst.msk [vmem:[#allocation0 + $0x20] ss:$-24 sm:$0x3] %vm1383_vm6, %v1382_v6   ;;  %v1398_v9 = vld [vmem:[#allocation0 + $0x10] sm:$0x1] }
 0x177   :  { %1685 = vst [vmem:[%s2886_s1 + $0x2] sm:$0x1] %v1398_v9  ;;  %v1416_v10 = vld [vmem:[#allocation0 + $0x28] sm:$0x1] }
 0x178   :  { %1688 = vst [vmem:[%s2886_s1 + $0x5] sm:$0x1] %v1416_v10 }
 0x179   :  { %v1389_v7 = vld [vmem:[#allocation0] sm:$0x1]  ;;  %v1404_v8 = vld [vmem:[#allocation0 + $0x18] sm:$0x1] }
 0x17a   :  { %1391 = vst [vmem:[%s2886_s1] sm:$0x1] %v1389_v7  ;;  %1686 = vst [vmem:[%s2886_s1 + $0x3] sm:$0x1] %v1404_v8 }
 0x17d   :  { %v1393_v11 = vld [vmem:[#allocation0 + $0x8] sm:$0x1]  ;;  %v1410_v12 = vld [vmem:[#allocation0 + $0x20] sm:$0x1] }
 0x17e   :  { %1684 = vst [vmem:[%s2886_s1 + $0x1] sm:$0x1] %v1393_v11  ;;  %1687 = vst [vmem:[%s2886_s1 + $0x4] sm:$0x1] %v1410_v12 }

// kernel: _l_total_xyz.1
= control target key start
LH: loop header
LB: loop body
LE: loop exit
PB: predicated region body
PF: predicated region fallthrough
CT: control target
= control target key end

     0   :  { %v42_v0 = vlaneseq  ;;  %v172_v1 = vmov 0.0   ;;  %v173_v5 = vmov 1983009808   ;;  %vm69_vm0 = vcmask 1041408   ;;  %s213_s0 = inlined_call_operand.vmem [shape: f32[2,768], index: 0, kind: input, shape index: {}]   ;;  %s214_s1 = inlined_call_operand.vmem [shape: f32[2,768], index: 1, kind: input, shape index: {}]   ;;  %s215_s2 = inlined_call_operand.vmem [shape: f32[1,1,768], index: 2, kind: output, shape index: {}]  }
   0x1   :  { %16 = vst [vmem:[#allocation2 + $0x8] sm:$0xf] %v172_v1  ;;  %v17_v2 = vld [vmem:[%s213_s0] sm:$0xff]  ;;  %v18_v4 = vld [vmem:[%s213_s0 + $0x8] sm:$0xf]  ;;  %v40_v6 = vunpack.c.l.s4 %v173_v5 }
   0x2   :  { %v19_v3 = vld [vmem:[%s214_s1] sm:$0xff]  ;;  %v20_v8 = vld [vmem:[%s214_s1 + $0x8] sm:$0xf]  ;;  %v43_v9 = vshrl.u32 %v42_v0, 7  ;;  %v174_v34 = vmov 1966171168  }
   0x3   :  { %v21_v7 = vsub.f32 %v17_v2, %v19_v3  ;;  %v22_v10 = vsub.f32 %v18_v4, %v20_v8  ;;  %v41_v11 = vunpack.c.0.s8 %v40_v6  ;;  %v122_v35 = vunpack.c.l.s4 %v174_v34 }
   0x4   :  { %vm161_vm1 = vcmp.lt.s32.totalorder %v42_v0, 768 }
   0x5   :  { %v25_v12 = vmul.f32 %v21_v7, %v21_v7  ;;  %v26_v13 = vmul.f32 %v22_v10, %v22_v10  ;;  %v44_v14 = vsub.s32 %v41_v11, %v43_v9  ;;  %v123_v47 = vunpack.c.0.s8 %v122_v35 }
   0x7   :  { %v38_v16 = vcombine.high %v25_v12, %v25_v12  ;;  %v45_v17 = vrot.slane %v25_v12, %v44_v14  ;;  %v126_v62 = vsub.s32 %v123_v47, %v43_v9 }
   0x8   :  { %v24_v15 = vld [vmem:[#allocation2 + $0x8] sm:$0xf] }
   0x9   :  { %v28_v18 = vadd.f32 %v26_v13, %v24_v15  ;;  %v52_v19 = vrot.slane %v38_v16, %v44_v14  ;;  %v53_v20 = vcombine.high %v45_v17, %v45_v17  ;;  %v70_v21 = vsel %vm69_vm0, %v45_v17, 0.0 }
   0xa   :  { %v71_v22 = vrot.slane %v70_v21, 4 }
   0xb   :  { %30 = vst [vmem:[#allocation2 + $0x8] sm:$0xf] %v28_v18  ;;  %v54_v23 = vcombine.high %v52_v19, %v52_v19  ;;  %v77_v24 = vsel %vm69_vm0, %v53_v20, 0.0  ;;  %v84_v25 = vsel %vm69_vm0, %v52_v19, 0.0 }
   0xc   :  { %v72_v26 = vadd.f32 %v71_v22, %v70_v21  ;;  %v78_v27 = vrot.slane %v77_v24, 4  ;;  %v85_v28 = vrot.slane %v84_v25, 4 }
   0xd   :  { %v91_v29 = vsel %vm69_vm0, %v54_v23, 0.0 }
   0xe   :  { %v73_v30 = vrot.slane %v72_v26, 2  ;;  %v79_v31 = vadd.f32 %v78_v27, %v77_v24  ;;  %v86_v32 = vadd.f32 %v85_v28, %v84_v25  ;;  %v92_v33 = vrot.slane %v91_v29, 4 }
  0x10   :  { %v74_v36 = vadd.f32 %v73_v30, %v72_v26  ;;  %v80_v37 = vrot.slane %v79_v31, 2  ;;  %v87_v38 = vrot.slane %v86_v32, 2  ;;  %v93_v39 = vadd.f32 %v92_v33, %v91_v29 }
  0x12   :  { %v168_v40 = vld.sshfl [vmem:[#allocation2 + $0x8] sm:$0x33 pattern:$0x76325410]  ;;  %v75_v42 = vrot.slane %v74_v36, 1  ;;  %v81_v43 = vadd.f32 %v80_v37, %v79_v31  ;;  %v88_v44 = vadd.f32 %v87_v38, %v86_v32  ;;  %v94_v45 = vrot.slane %v93_v39, 2 }
  0x13   :  { %v62_v41 = vcombine.high %v168_v40, %v168_v40  ;;  %v98_v46 = vsel %vm69_vm0, %v168_v40, 0.0 }
  0x14   :  { %v76_v48 = vadd.f32 %v75_v42, %v74_v36  ;;  %v82_v49 = vrot.slane %v81_v43, 1  ;;  %v89_v50 = vrot.slane %v88_v44, 1  ;;  %v99_v51 = vrot.slane %v98_v46, 4 }
  0x15   :  { %v95_v52 = vadd.f32 %v94_v45, %v93_v39  ;;  %v105_v53 = vsel %vm69_vm0, %v62_v41, 0.0 }
  0x16   :  { %v83_v54 = vadd.f32 %v82_v49, %v81_v43  ;;  %v100_v55 = vadd.f32 %v99_v51, %v98_v46  ;;  %v106_v56 = vrot.slane %v105_v53, 4  ;;  %v90_v57 = vadd.f32 %v89_v50, %v88_v44 }
  0x17   :  { %v96_v58 = vrot.slane %v95_v52, 1 }
  0x18   :  { %v101_v59 = vrot.slane %v100_v55, 2  ;;  %v107_v60 = vadd.f32 %v106_v56, %v105_v53  ;;  %v118_v61 = vcombine.low %v76_v48, %v83_v54 }
  0x19   :  { %v97_v63 = vadd.f32 %v96_v58, %v95_v52 }
  0x1a   :  { %v102_v1 = vadd.f32 %v101_v59, %v100_v55  ;;  %v108_v2 = vrot.slane %v107_v60, 2  ;;  %v127_v6 = vrot.slane %v118_v61, %v126_v62 }
  0x1b   :  { %v119_v3 = vcombine.low %v90_v57, %v97_v63 }
  0x1c   :  { %v103_v4 = vrot.slane %v102_v1, 1  ;;  %v109_v5 = vadd.f32 %v108_v2, %v107_v60 }
  0x1d   :  { %v134_v7 = vrot.slane %v119_v3, %v126_v62 }
  0x1e   :  { %v110_v8 = vrot.slane %v109_v5, 1  ;;  %v104_v10 = vadd.f32 %v103_v4, %v102_v1 }
  0x1f   :  { %v142_v12 = vcombine.low %v127_v6, %v134_v7 }
  0x20   :  { %v111_v11 = vadd.f32 %v110_v8, %v109_v5 }
  0x21   :  { %v149_v15 = vrot.slane %v142_v12, %v126_v62 }
  0x22   :  { %v120_v13 = vcombine.low %v104_v10, %v111_v11 }
  0x24   :  { %v141_v14 = vrot.slane %v120_v13, %v126_v62 }
  0x26   :  { %v156_v16 = vrot.slane %v141_v14, %v126_v62 }
  0x28   :  { %v157_v17 = vcombine.low %v149_v15, %v156_v16 }
  0x2a   :  { %163 = vst.msk [vmem:[%s215_s2] sm:$0x3f] %vm161_vm1, %v157_v17 }

</bundles_post_ra>
